<compile_context>
chip_gen: v5e
topology: v5e:2x2
jax: 0.10.0
libtpu: 0.0.40
codegen_flags: <defaults>
</compile_context>

<pallas_src>
import math
from functools import partial

import jax
import jax.numpy as jnp
from jax.experimental import pallas as pl
from jax.experimental.pallas import tpu as pltpu

K_IN = 6        # real input features
K_PAD = 8       # padded contraction dim (f32 sublane granularity)
HID = 64        # hidden width
N_OUT = 4       # real output width (4 actions)
N_OUT_PAD = 8   # padded output rows (f32 sublane granularity) in the transposed layout

_HIGHEST = jax.lax.Precision.HIGHEST


def _round_up(n, m):
    return (n + m - 1) // m * m


def mlp_kernel(x_ref, w1_ref, b1_ref, w2_ref, b2_ref, w3t_ref, b3t_ref, o_ref):
    # Layer 1: Linear(8(pad from 6) -> 64) + ReLU, f32 MXU with f32 accumulation.
    h1 = jnp.dot(x_ref[...], w1_ref[...],
                 preferred_element_type=jnp.float32, precision=_HIGHEST)
    h1 = jnp.maximum(h1 + b1_ref[...], 0.0)
    # Layer 2: Linear(64 -> 64) + ReLU.
    h2 = jnp.dot(h1, w2_ref[...],
                 preferred_element_type=jnp.float32, precision=_HIGHEST)
    h2 = jnp.maximum(h2 + b2_ref[...], 0.0)
    # Layer 3 (transposed): w3^T (8, 64) contracted with h2 (tile_b, 64) on the
    # 64-dim -> (8, tile_b).  Batch lies on the lane axis -> unmasked full-lane vst.
    o = jax.lax.dot_general(w3t_ref[...], h2,
                            dimension_numbers=(((1,), (1,)), ((), ())),
                            preferred_element_type=jnp.float32,
                            precision=_HIGHEST)
    o_ref[...] = o + b3t_ref[...]          # (8, 1) bias lane-broadcasts


def pack_params(params):
    """Pad f32 (in, out)-layout params into the kernel's operand layouts."""
    w1, b1, w2, b2, w3, b3 = params
    w1p = jnp.zeros((K_PAD, HID), jnp.float32).at[:K_IN, :].set(w1)
    b1p = b1.reshape(1, HID).astype(jnp.float32)
    w2p = w2.astype(jnp.float32)
    b2p = b2.reshape(1, HID).astype(jnp.float32)
    # Layer 3 stored transposed: (N_OUT_PAD, HID) with zero rows for padded outputs.
    w3tp = jnp.zeros((N_OUT_PAD, HID), jnp.float32).at[:N_OUT, :].set(w3.T)
    b3tp = jnp.zeros((N_OUT_PAD, 1), jnp.float32).at[:N_OUT, 0].set(b3)
    return (w1p, b1p, w2p, b2p, w3tp, b3tp)


@partial(jax.jit, static_argnums=(2,))
def _forward_impl(x, packed_params, tile_b):
    w1p, b1p, w2p, b2p, w3tp, b3tp = packed_params
    B = x.shape[0]
    b_pad = _round_up(B, tile_b)
    n_tiles = b_pad // tile_b

    # Pad batch to a tile multiple and features 6 -> 8 (fused on-device under jit).
    x_pad = jnp.zeros((b_pad, K_PAD), jnp.float32).at[:B, :K_IN].set(
        x.astype(jnp.float32))

    out_t = pl.pallas_call(
        mlp_kernel,
        out_shape=jax.ShapeDtypeStruct((N_OUT_PAD, b_pad), jnp.float32),
        grid_spec=pltpu.PrefetchScalarGridSpec(
            num_scalar_prefetch=0,
            grid=(n_tiles,),
            in_specs=[
                pl.BlockSpec((tile_b, K_PAD), lambda i: (i, 0)),      # x tile (pipelined)
                pl.BlockSpec((K_PAD, HID), lambda i: (0, 0)),         # w1 (VMEM-resident)
                pl.BlockSpec((1, HID), lambda i: (0, 0)),             # b1
                pl.BlockSpec((HID, HID), lambda i: (0, 0)),           # w2
                pl.BlockSpec((1, HID), lambda i: (0, 0)),             # b2
                pl.BlockSpec((N_OUT_PAD, HID), lambda i: (0, 0)),     # w3^T (padded rows)
                pl.BlockSpec((N_OUT_PAD, 1), lambda i: (0, 0)),       # b3^T (padded rows)
            ],
            out_specs=pl.BlockSpec((N_OUT_PAD, tile_b), lambda i: (0, i)),
        ),
        compiler_params=pltpu.CompilerParams(
            dimension_semantics=("parallel",),   # batch tiles shard across TCs on v7x
        ),
    )(x_pad, w1p, b1p, w2p, b2p, w3tp, b3tp)

    # Slice real actions / real batch rows and restore (B, 4) layout (fused in jit).
    return out_t[:N_OUT, :B].T


def hiv_dqn_forward(x, packed_params, tile_b=None):
    """Full MLP forward. x: (B, 6) float32 -> (B, 4) float32."""
    B = x.shape[0]
    if tile_b is None:
        b128 = _round_up(max(B, 1), 128)
        # Aim for tiles <= 2048 rows and >= 2 grid steps (v7x megacore) when possible.
        n_target = max(2, -(-b128 // 2048))
        tile_b = max(128, min(2048, _round_up(-(-b128 // n_target), 128)))
    tile_b = _round_up(int(tile_b), 128)
    return _forward_impl(x, packed_params, tile_b)


def xavier_uniform(key, fan_in, fan_out):
    # Matches torch.nn.init.xavier_uniform_ (gain=1): U(-a, a), a=sqrt(6/(fan_in+fan_out)).
    # Stored as (in, out) for the kernel (x @ W layout; transpose of nn.Linear storage).
    a = math.sqrt(6.0 / (fan_in + fan_out))
    return jax.random.uniform(key, (fan_in, fan_out), minval=-a, maxval=a,
                              dtype=jnp.float32)


def init_params(key):
    k1, k2, k3 = jax.random.split(key, 3)
    w1 = xavier_uniform(k1, K_IN, HID)
    b1 = jnp.zeros((HID,), jnp.float32)
    w2 = xavier_uniform(k2, HID, HID)
    b2 = jnp.zeros((HID,), jnp.float32)
    w3 = xavier_uniform(k3, HID, N_OUT)
    b3 = jnp.zeros((N_OUT,), jnp.float32)
    return (w1, b1, w2, b2, w3, b3)


def reference_forward(x, params, precision=None):
    """f32 semantics of the PyTorch module (optionally with explicit matmul precision)."""
    w1, b1, w2, b2, w3, b3 = params
    h1 = jnp.maximum(jnp.dot(x, w1, precision=precision) + b1, 0.0)
    h2 = jnp.maximum(jnp.dot(h1, w2, precision=precision) + b2, 0.0)
    return jnp.dot(h2, w3, precision=precision) + b3


if __name__ == "__main__":
    key = jax.random.PRNGKey(0)
    pkey, xkey, xkey2 = jax.random.split(key, 3)
    params = init_params(pkey)
    packed = pack_params(params)

    # Small batch of HIV-state inputs: (batch=2, features=6)
    x = jax.random.normal(xkey, (2, K_IN), dtype=jnp.float32)
    out = jax.block_until_ready(hiv_dqn_forward(x, packed))
    assert out.shape == (2, N_OUT)

    ref = reference_forward(x, params, precision=_HIGHEST)
    ref_f32 = reference_forward(x, params)
    assert jnp.allclose(out, ref, atol=1e-3, rtol=1e-3), (out, ref)
    assert jnp.allclose(out, ref_f32, atol=2e-2, rtol=2e-2), (out, ref_f32)

    # A second, multi-tile / batch-padded case (exercises grid + padding paths).
    x2 = jax.random.normal(xkey2, (260, K_IN), dtype=jnp.float32)
    out2 = jax.block_until_ready(hiv_dqn_forward(x2, packed))
    ref2 = reference_forward(x2, params, precision=_HIGHEST)
    assert out2.shape == (260, N_OUT)
    assert jnp.allclose(out2, ref2, atol=1e-3, rtol=1e-3)

    print("KERNEL_OK")
</pallas_src>

<mosaic_0001>
module attributes {stable_mosaic.version = 11 : i64} {
  func.func @mlp_kernel(%arg0: i32, %arg1: memref<128x8xf32, #tpu.memory_space<vmem>>, %arg2: memref<8x64xf32, #tpu.memory_space<vmem>>, %arg3: memref<1x64xf32, #tpu.memory_space<vmem>>, %arg4: memref<64x64xf32, #tpu.memory_space<vmem>>, %arg5: memref<1x64xf32, #tpu.memory_space<vmem>>, %arg6: memref<8x64xf32, #tpu.memory_space<vmem>>, %arg7: memref<8x1xf32, #tpu.memory_space<vmem>>, %arg8: memref<8x128xf32, #tpu.memory_space<vmem>>) attributes {dimension_semantics = [#tpu.dimension_semantics<parallel>], iteration_bounds = array<i64: 1>, scalar_prefetch = 0 : i64, scratch_operands = 0 : i64, tpu.core_type = #tpu.core_type<tc>, window_params = [{transform_indices = @transform_0, window_bounds = array<i64: 128, 8>}, {pipeline_mode = #tpu.pipeline_mode<synchronous>, transform_indices = @transform_1, window_bounds = array<i64: 8, 64>}, {pipeline_mode = #tpu.pipeline_mode<synchronous>, transform_indices = @transform_2, window_bounds = array<i64: 1, 64>}, {pipeline_mode = #tpu.pipeline_mode<synchronous>, transform_indices = @transform_3, window_bounds = array<i64: 64, 64>}, {pipeline_mode = #tpu.pipeline_mode<synchronous>, transform_indices = @transform_4, window_bounds = array<i64: 1, 64>}, {pipeline_mode = #tpu.pipeline_mode<synchronous>, transform_indices = @transform_5, window_bounds = array<i64: 8, 64>}, {pipeline_mode = #tpu.pipeline_mode<synchronous>, transform_indices = @transform_6, window_bounds = array<i64: 8, 1>}, {transform_indices = @transform_7, window_bounds = array<i64: 8, 128>}]} {
    %c0 = arith.constant 0 : index
    %c0_0 = arith.constant 0 : index
    %0 = vector.load %arg1[%c0, %c0_0] : memref<128x8xf32, #tpu.memory_space<vmem>>, vector<128x8xf32>
    %c0_1 = arith.constant 0 : index
    %c0_2 = arith.constant 0 : index
    %1 = vector.load %arg2[%c0_1, %c0_2] : memref<8x64xf32, #tpu.memory_space<vmem>>, vector<8x64xf32>
    %cst = arith.constant dense<0.000000e+00> : vector<128x64xf32>
    %2 = tpu.matmul %0, %1, %cst {dimension_numbers = #tpu.dot_dimension_numbers<[1], [0], [0], [1], [0, 0, 1, 1], [], []>, precision = #tpu.contract_precision<fp32>} : vector<128x8xf32>, vector<8x64xf32>, vector<128x64xf32> -> vector<128x64xf32>
    %c0_3 = arith.constant 0 : index
    %c0_4 = arith.constant 0 : index
    %3 = vector.load %arg3[%c0_3, %c0_4] : memref<1x64xf32, #tpu.memory_space<vmem>>, vector<1x64xf32>
    %4 = vector.broadcast %3 : vector<1x64xf32> to vector<128x64xf32>
    %5 = arith.addf %2, %4 : vector<128x64xf32>
    %cst_5 = arith.constant 0.000000e+00 : f32
    %6 = vector.broadcast %cst_5 : f32 to vector<128x64xf32>
    %7 = arith.maximumf %5, %6 : vector<128x64xf32>
    %c0_6 = arith.constant 0 : index
    %c0_7 = arith.constant 0 : index
    %8 = vector.load %arg4[%c0_6, %c0_7] : memref<64x64xf32, #tpu.memory_space<vmem>>, vector<64x64xf32>
    %cst_8 = arith.constant dense<0.000000e+00> : vector<128x64xf32>
    %9 = tpu.matmul %7, %8, %cst_8 {dimension_numbers = #tpu.dot_dimension_numbers<[1], [0], [0], [1], [0, 0, 1, 1], [], []>, precision = #tpu.contract_precision<fp32>} : vector<128x64xf32>, vector<64x64xf32>, vector<128x64xf32> -> vector<128x64xf32>
    %c0_9 = arith.constant 0 : index
    %c0_10 = arith.constant 0 : index
    %10 = vector.load %arg5[%c0_9, %c0_10] : memref<1x64xf32, #tpu.memory_space<vmem>>, vector<1x64xf32>
    %11 = vector.broadcast %10 : vector<1x64xf32> to vector<128x64xf32>
    %12 = arith.addf %9, %11 : vector<128x64xf32>
    %cst_11 = arith.constant 0.000000e+00 : f32
    %13 = vector.broadcast %cst_11 : f32 to vector<128x64xf32>
    %14 = arith.maximumf %12, %13 : vector<128x64xf32>
    %c0_12 = arith.constant 0 : index
    %c0_13 = arith.constant 0 : index
    %15 = vector.load %arg6[%c0_12, %c0_13] : memref<8x64xf32, #tpu.memory_space<vmem>>, vector<8x64xf32>
    %cst_14 = arith.constant dense<0.000000e+00> : vector<8x128xf32>
    %16 = tpu.matmul %15, %14, %cst_14 {dimension_numbers = #tpu.dot_dimension_numbers<[1], [1], [0], [0], [0, 0, 1, 0], [], []>, precision = #tpu.contract_precision<fp32>} : vector<8x64xf32>, vector<128x64xf32>, vector<8x128xf32> -> vector<8x128xf32>
    %c0_15 = arith.constant 0 : index
    %c0_16 = arith.constant 0 : index
    %17 = vector.load %arg7[%c0_15, %c0_16] : memref<8x1xf32, #tpu.memory_space<vmem>>, vector<8x1xf32>
    %18 = vector.broadcast %17 : vector<8x1xf32> to vector<8x128xf32>
    %19 = arith.addf %16, %18 : vector<8x128xf32>
    %c0_17 = arith.constant 0 : index
    %c0_18 = arith.constant 0 : index
    %20 = vector.load %arg8[%c0_17, %c0_18] : memref<8x128xf32, #tpu.memory_space<vmem>>, vector<8x128xf32>
    tpu.vector_store %arg8[%c0_17, %c0_18], %19 {strides = array<i32>} : memref<8x128xf32, #tpu.memory_space<vmem>>, vector<8x128xf32>,
    return
  }
  func.func @transform_0(%arg0: i32) -> (i32, i32) {
    %c0_i32 = arith.constant 0 : i32
    %c0_i32_0 = arith.constant 0 : i32
    return %arg0, %c0_i32 : i32, i32
  }
  func.func @transform_1(%arg0: i32) -> (i32, i32) {
    %c0_i32 = arith.constant 0 : i32
    %c0_i32_0 = arith.constant 0 : i32
    %c0_i32_1 = arith.constant 0 : i32
    return %c0_i32, %c0_i32_0 : i32, i32
  }
  func.func @transform_2(%arg0: i32) -> (i32, i32) {
    %c0_i32 = arith.constant 0 : i32
    %c0_i32_0 = arith.constant 0 : i32
    %c0_i32_1 = arith.constant 0 : i32
    return %c0_i32, %c0_i32_0 : i32, i32
  }
  func.func @transform_3(%arg0: i32) -> (i32, i32) {
    %c0_i32 = arith.constant 0 : i32
    %c0_i32_0 = arith.constant 0 : i32
    %c0_i32_1 = arith.constant 0 : i32
    return %c0_i32, %c0_i32_0 : i32, i32
  }
  func.func @transform_4(%arg0: i32) -> (i32, i32) {
    %c0_i32 = arith.constant 0 : i32
    %c0_i32_0 = arith.constant 0 : i32
    %c0_i32_1 = arith.constant 0 : i32
    return %c0_i32, %c0_i32_0 : i32, i32
  }
  func.func @transform_5(%arg0: i32) -> (i32, i32) {
    %c0_i32 = arith.constant 0 : i32
    %c0_i32_0 = arith.constant 0 : i32
    %c0_i32_1 = arith.constant 0 : i32
    return %c0_i32, %c0_i32_0 : i32, i32
  }
  func.func @transform_6(%arg0: i32) -> (i32, i32) {
    %c0_i32 = arith.constant 0 : i32
    %c0_i32_0 = arith.constant 0 : i32
    %c0_i32_1 = arith.constant 0 : i32
    return %c0_i32, %c0_i32_0 : i32, i32
  }
  func.func @transform_7(%arg0: i32) -> (i32, i32) {
    %c0_i32 = arith.constant 0 : i32
    %c0_i32_0 = arith.constant 0 : i32
    return %c0_i32, %arg0 : i32, i32
  }
}

</mosaic_0001>

<bundles_post_ra>
// kernel: _forward_impl.1
= control target key start
LH: loop header
LB: loop body
LE: loop exit
PB: predicated region body
PF: predicated region fallthrough
CT: control target
= control target key end

     0   :  { %vm47_vm0 = vcmask 64512   ;;  %vm735_vm1 = vcmask 523264   ;;  %s2892_s1 = inlined_call_operand.vmem [shape: f32[8,64], index: 1, kind: input, shape index: {}]   ;;  %s2893_s0 = inlined_call_operand.vmem [shape: f32[128,8], index: 0, kind: input, shape index: {}]   ;;  %s2894_s2 = inlined_call_operand.vmem [shape: f32[1,64], index: 2, kind: input, shape index: {}]   ;;  %s2895_s3 = inlined_call_operand.vmem [shape: f32[64,64], index: 3, kind: input, shape index: {}]   ;;  %s2896_s4 = inlined_call_operand.vmem [shape: f32[1,64], index: 4, kind: input, shape index: {}]   ;;  %s2897_s5 = inlined_call_operand.vmem [shape: f32[8,64], index: 5, kind: input, shape index: {}]   ;;  %s2898_s6 = inlined_call_operand.vmem [shape: f32[8,1], index: 6, kind: input, shape index: {}]   ;;  %s2899_s7 = inlined_call_operand.vmem [shape: f32[8,128], index: 7, kind: output, shape index: {}]  }
   0x1   :  { %v42_v0 = vld [vmem:[%s2892_s1] sm:$0xff]  ;;  %v27_v6 = vld [vmem:[%s2893_s0 + $0x8] sm:$0xff]  ;;  %v28_v8 = vld [vmem:[%s2893_s0 + $0x10] sm:$0xff] }
   0x2   :  { %v26_v1 = vld [vmem:[%s2893_s0] sm:$0xff]  ;;  %v111_v3 = vand.u32 4294901760, %v42_v0  ;;  %v39_v7 = vld [vmem:[%s2893_s0 + $0x68] sm:$0xff]  ;;  %v52_v11 = vsel %vm47_vm0, %v27_v6, 0  ;;  %v40_v13 = vld [vmem:[%s2893_s0 + $0x70] sm:$0xff]  ;;  %v55_v19 = vsel %vm47_vm0, %v28_v8, 0 }
   0x3   :  { %v38_v2 = vld [vmem:[%s2893_s0 + $0x60] sm:$0xff]  ;;  %v49_v4 = vsel %vm47_vm0, %v26_v1, 0  ;;  %v88_v12 = vsel %vm47_vm0, %v39_v7, 0  ;;  %v1982_v15 = vand.u32 4294901760, %v52_v11  ;;  %v91_v20 = vsel %vm47_vm0, %v40_v13, 0  ;;  %v29_v34 = vld [vmem:[%s2893_s0 + $0x18] sm:$0xff] }
   0x4   :  { %v85_v5 = vsel %vm47_vm0, %v38_v2, 0  ;;  %v1973_v9 = vand.u32 4294901760, %v49_v4  ;;  %112 = vmatpush.msra.mxu0 %v111_v3  ;;  %1906 = vmatpush.msra.mxu2 %v111_v3  ;;  %v258_v14 = vsub.f32 %v42_v0, %v111_v3  ;;  %v1984_v16 = vand.u32 4294901760, %v88_v12  ;;  %v41_v37 = vld [vmem:[%s2893_s0 + $0x78] sm:$0xff]  ;;  %v30_v50 = vld [vmem:[%s2893_s0 + $0x20] sm:$0xff]  ;;  %v31_v61 = vld [vmem:[%s2893_s0 + $0x28] sm:$0xff] }
   0x5   :  { %v1975_v10 = vand.u32 4294901760, %v85_v5  ;;  %v1995_v22 = vsub.f32 %v52_v11, %v1982_v15  ;;  %v2002_v27 = vand.u32 4294901760, %v55_v19  ;;  %v2004_v28 = vand.u32 4294901760, %v91_v20  ;;  %v34_v6 = vld [vmem:[%s2893_s0 + $0x40] sm:$0xff]  ;;  %v32_v8 = vld [vmem:[%s2893_s0 + $0x30] sm:$0xff] }
   0x6   :  { %v1987_v17 = vsub.f32 %v49_v4, %v1973_v9  ;;  %v259_v21 = vand.u32 4294901760, %v258_v14  ;;  %v1998_v23 = vsub.f32 %v88_v12, %v1984_v16  ;;  %345 = vmatpush.msrb.mxu2 %v258_v14  ;;  %v58_v42 = vsel %vm47_vm0, %v29_v34, 0 }
   0x7   :  { %v1990_v18 = vsub.f32 %v85_v5, %v1975_v10  ;;  %v123_v31 = vand.u32 4294901760, %v1995_v22  ;;  %v2021_v38 = vsub.f32 %v55_v19, %v2002_v27  ;;  %v2030_v41 = vsub.f32 %v91_v20, %v2004_v28 }
   0x8   :  { %v115_v24 = vand.u32 4294901760, %v1987_v17  ;;  %v260_v26 = vsub.f32 %v258_v14, %v259_v21  ;;  %559 = vmatpush.msrb.mxu0 %v259_v21  ;;  %v219_v32 = vand.u32 4294901760, %v1998_v23  ;;  %v94_v43 = vsel %vm47_vm0, %v41_v37, 0  ;;  %v35_v21 = vld [vmem:[%s2893_s0 + $0x48] sm:$0xff] }
   0x9   :  { %v211_v25 = vand.u32 4294901760, %v1990_v18  ;;  %v124_v39 = vsub.f32 %v1995_v22, %v123_v31  ;;  %v131_v44 = vand.u32 4294901760, %v2021_v38  ;;  %v2037_v45 = vand.u32 4294901760, %v58_v42 }
   0xa   :  { %v116_v29 = vsub.f32 %v1987_v17, %v115_v24  ;;  %v261_v33 = vand.u32 4294901760, %v260_v26  ;;  %v220_v40 = vsub.f32 %v1998_v23, %v219_v32  ;;  %v227_v48 = vand.u32 4294901760, %v2030_v41 }
   0xb   :  { %v212_v30 = vsub.f32 %v1990_v18, %v211_v25  ;;  %v125_v46 = vand.u32 4294901760, %v124_v39  ;;  %v2040_v49 = vand.u32 4294901760, %v94_v43  ;;  %v132_v51 = vsub.f32 %v2021_v38, %v131_v44  ;;  %v36_v39 = vld [vmem:[%s2893_s0 + $0x50] sm:$0xff] }
   0xc   :  { %v117_v35 = vand.u32 4294901760, %v116_v29  ;;  %262 = vmatpush.msra.mxu1 %v261_v33  ;;  %1907 = vmatpush.msra.mxu3 %v261_v33  ;;  %v221_v47 = vand.u32 4294901760, %v220_v40  ;;  %v228_v52 = vsub.f32 %v2030_v41, %v227_v48  ;;  %v2052_v53 = vsub.f32 %v58_v42, %v2037_v45  ;;  %v33_v29 = vld [vmem:[%s2893_s0 + $0x38] sm:$0xff] }
   0xd   :  { %v213_v36 = vand.u32 4294901760, %v212_v30  ;;  %264 = vmatmul.f32.vlgmr.msra.gmra.mxu1 %v1973_v9  ;;  %312 = vmatmul.f32.vlgmr.msra.gmra.mxu3 %v1975_v10  ;;  %v2055_v54 = vsub.f32 %v94_v43, %v2040_v49  ;;  %v61_v55 = vsel %vm47_vm0, %v30_v50, 0  ;;  %v133_v56 = vand.u32 4294901760, %v132_v51 }
   0xe   :  { %118 = vmatmul.f32.vlgmr.msra.gmra.mxu0 %v117_v35  ;;  %443 = vmatpush.msrb.mxu3 %v111_v3  ;;  %v229_v57 = vand.u32 4294901760, %v228_v52  ;;  %v139_v58 = vand.u32 4294901760, %v2052_v53  ;;  %v2062_v60 = vand.u32 4294901760, %v61_v55  ;;  %v64_v1 = vsel %vm47_vm0, %v31_v61, 0 }
   0xf   :  { %214 = vmatmul.f32.vlgmr.msra.gmra.mxu2 %v213_v36  ;;  %641 = vmatpush.msrb.mxu1 %v111_v3  ;;  %v235_v59 = vand.u32 4294901760, %v2055_v54  ;;  %v2080_v5 = vand.u32 4294901760, %v64_v1  ;;  %v73_v7 = vsel %vm47_vm0, %v34_v6, 0  ;;  %v67_v13 = vsel %vm47_vm0, %v32_v8, 0 }
  0x10   :  { %v140_v62 = vsub.f32 %v2052_v53, %v139_v58  ;;  %v2074_v0 = vsub.f32 %v61_v55, %v2062_v60  ;;  %v2099_v20 = vand.u32 4294901760, %v67_v13  ;;  %v76_v26 = vsel %vm47_vm0, %v35_v21, 0 }
  0x11   :  { %v236_v63 = vsub.f32 %v2055_v54, %v235_v59  ;;  %v2093_v12 = vsub.f32 %v64_v1, %v2080_v5  ;;  %v70_v34 = vsel %vm47_vm0, %v33_v29, 0  ;;  %v79_v40 = vsel %vm47_vm0, %v36_v39, 0 }
  0x12   :  { %v141_v2 = vand.u32 4294901760, %v140_v62  ;;  %v147_v4 = vand.u32 4294901760, %v2074_v0  ;;  %v162_v33 = vsub.f32 %v67_v13, %v2099_v20  ;;  %v2115_v37 = vand.u32 4294901760, %v70_v34 }
  0x13   :  { %v237_v3 = vand.u32 4294901760, %v236_v63  ;;  %v155_v19 = vand.u32 4294901760, %v2093_v12  ;;  %v2137_v55 = vand.u32 4294901760, %v76_v26  ;;  %v2144_v63 = vand.u32 4294901760, %v79_v40 }
  0x14   :  { %v148_v11 = vsub.f32 %v2074_v0, %v147_v4  ;;  %v163_v36 = vand.u32 4294901760, %v162_v33  ;;  %v170_v43 = vsub.f32 %v70_v34, %v2115_v37 }
  0x15   :  { %268 = vmatmul.f32.gmra.mxu1 %v1982_v15  ;;  %316 = vmatmul.f32.gmra.mxu3 %v1984_v16  ;;  %v156_v30 = vsub.f32 %v2093_v12, %v155_v19 }
  0x16   :  { %126 = vmatmul.f32.gmra.mxu0 %v125_v46  ;;  %v149_v14 = vand.u32 4294901760, %v148_v11  ;;  %v164_v42 = vsub.f32 %v162_v33, %v163_v36  ;;  %v2126_v46 = vand.u32 4294901760, %v73_v7 }
  0x17   :  { %222 = vmatmul.f32.gmra.mxu2 %v221_v47  ;;  %v157_v35 = vand.u32 4294901760, %v156_v30  ;;  %v37_v47 = vld [vmem:[%s2893_s0 + $0x58] sm:$0xff] }
  0x18   :  { %v82_v50 = vsel %vm47_vm0, %v37_v47, 0  ;;  %v178_v52 = vsub.f32 %v73_v7, %v2126_v46  ;;  %v727_v47 = vld [vmem:[%s2895_s3 + $0x20] sm:$0xff] }
  0x1d   :  { %272 = vmatmul.f32.gmra.mxu1 %v2002_v27  ;;  %320 = vmatmul.f32.gmra.mxu3 %v2004_v28 }
  0x1e   :  { %134 = vmatmul.f32.gmra.mxu0 %v133_v56 }
  0x1f   :  { %230 = vmatmul.f32.gmra.mxu2 %v229_v57  ;;  %v186_v57 = vsub.f32 %v76_v26, %v2137_v55  ;;  %v729_v26 = vld [vmem:[%s2895_s3 + $0x30] sm:$0xff] }
  0x21   :  { %v187_v62 = vand.u32 4294901760, %v186_v57 }
  0x25   :  { %276 = vmatmul.f32.gmra.mxu1 %v2037_v45  ;;  %324 = vmatmul.f32.gmra.mxu3 %v2040_v49 }
  0x26   :  { %142 = vmatmul.f32.gmra.mxu0 %v141_v2 }
  0x27   :  { %238 = vmatmul.f32.gmra.mxu2 %v237_v3  ;;  %v2151_v3 = vand.u32 4294901760, %v82_v50 }
  0x2d   :  { %280 = vmatmul.f32.gmra.mxu1 %v2062_v60  ;;  %447 = vmatmul.f32.vlgmr.msrb.gmra.mxu3 %v115_v24  ;;  %v171_v24 = vand.u32 4294901760, %v170_v43 }
  0x2e   :  { %150 = vmatmul.f32.gmra.mxu0 %v149_v14 }
  0x2f   :  { %348 = vmatmul.f32.vlgmr.msrb.gmra.mxu2 %v1987_v17  ;;  %v165_v17 = vand.u32 4294901760, %v164_v42  ;;  %v172_v51 = vsub.f32 %v170_v43, %v171_v24 }
  0x35   :  { %284 = vmatmul.f32.gmra.mxu1 %v2080_v5  ;;  %453 = vmatmul.f32.gmra.mxu3 %v123_v31  ;;  %v179_v31 = vand.u32 4294901760, %v178_v52 }
  0x36   :  { %158 = vmatmul.f32.gmra.mxu0 %v157_v35 }
  0x37   :  { %353 = vmatmul.f32.gmra.mxu2 %v1995_v22  ;;  %v173_v22 = vand.u32 4294901760, %v172_v51  ;;  %v180_v56 = vsub.f32 %v178_v52, %v179_v31 }
  0x39   :  { %v181_v61 = vand.u32 4294901760, %v180_v56 }
  0x3d   :  { %288 = vmatmul.f32.gmra.mxu1 %v2099_v20  ;;  %459 = vmatmul.f32.gmra.mxu3 %v131_v44  ;;  %v194_v44 = vsub.f32 %v79_v40, %v2144_v63 }
  0x3e   :  { %166 = vmatmul.f32.gmra.mxu0 %v165_v17 }
  0x3f   :  { %358 = vmatmul.f32.gmra.mxu2 %v2021_v38  ;;  %v188_v38 = vsub.f32 %v186_v57, %v187_v62  ;;  %v195_v2 = vand.u32 4294901760, %v194_v44 }
  0x41   :  { %v189_v1 = vand.u32 4294901760, %v188_v38 }
  0x45   :  { %292 = vmatmul.f32.gmra.mxu1 %v2115_v37  ;;  %465 = vmatmul.f32.gmra.mxu3 %v139_v58  ;;  %v202_v58 = vsub.f32 %v82_v50, %v2151_v3  ;;  %v2279_v50 = vand.u32 4294901760, %v727_v47 }
  0x46   :  { %174 = vmatmul.f32.gmra.mxu0 %v173_v22  ;;  %v726_v22 = vld [vmem:[%s2895_s3 + $0x18] sm:$0xff] }
  0x47   :  { %363 = vmatmul.f32.gmra.mxu2 %v2052_v53  ;;  %v196_v53 = vsub.f32 %v194_v44, %v195_v2  ;;  %v203_v7 = vand.u32 4294901760, %v202_v58  ;;  %v2294_v56 = vand.u32 4294901760, %v726_v22 }
  0x49   :  { %v197_v6 = vand.u32 4294901760, %v196_v53  ;;  %v204_v8 = vsub.f32 %v202_v58, %v203_v7  ;;  %v970_v38 = vsub.f32 %v726_v22, %v2294_v56 }
  0x4d   :  { %296 = vmatmul.f32.gmra.mxu1 %v2126_v46  ;;  %471 = vmatmul.f32.gmra.mxu3 %v147_v4 }
  0x4e   :  { %182 = vmatmul.f32.gmra.mxu0 %v181_v61 }
  0x4f   :  { %368 = vmatmul.f32.gmra.mxu2 %v2074_v0  ;;  %v205_v0 = vand.u32 4294901760, %v204_v8 }
  0x55   :  { %300 = vmatmul.f32.gmra.mxu1 %v2137_v55  ;;  %477 = vmatmul.f32.gmra.mxu3 %v155_v19 }
  0x56   :  { %190 = vmatmul.f32.gmra.mxu0 %v189_v1 }
  0x57   :  { %373 = vmatmul.f32.gmra.mxu2 %v2093_v12 }
  0x5d   :  { %304 = vmatmul.f32.gmra.mxu1 %v2144_v63  ;;  %483 = vmatmul.f32.gmra.mxu3 %v163_v36 }
  0x5e   :  { %198 = vmatmul.f32.gmra.mxu0 %v197_v6 }
  0x5f   :  { %378 = vmatmul.f32.gmra.mxu2 %v162_v33 }
  0x65   :  { %308 = vmatmul.f32.gmra.mxu1 %v2151_v3  ;;  %489 = vmatmul.f32.gmra.mxu3 %v171_v24 }
  0x66   :  { %206 = vmatmul.f32.gmra.mxu0 %v205_v0 }
  0x67   :  { %383 = vmatmul.f32.gmra.mxu2 %v170_v43  ;;  %v728_v43 = vld [vmem:[%s2895_s3 + $0x28] sm:$0xff] }
  0x68   :  { %v2269_v24 = vand.u32 4294901760, %v728_v43 }
  0x6d   :  { %495 = vmatmul.f32.gmra.mxu3 %v179_v31  ;;  %643 = vmatmul.f32.vlgmr.msrb.gmra.mxu1 %v1973_v9 }
  0x6e   :  { %561 = vmatmul.f32.vlgmr.msrb.gmra.mxu0 %v1973_v9 }
  0x6f   :  { %388 = vmatmul.f32.gmra.mxu2 %v178_v52 }
  0x75   :  { %501 = vmatmul.f32.gmra.mxu3 %v187_v62  ;;  %647 = vmatmul.f32.gmra.mxu1 %v1982_v15  ;;  %v725_v62 = vld [vmem:[%s2895_s3 + $0x10] sm:$0xff] }
  0x76   :  { %565 = vmatmul.f32.gmra.mxu0 %v1982_v15 }
  0x77   :  { %393 = vmatmul.f32.gmra.mxu2 %v186_v57 }
  0x7d   :  { %507 = vmatmul.f32.gmra.mxu3 %v195_v2  ;;  %651 = vmatmul.f32.gmra.mxu1 %v2002_v27  ;;  %v724_v2 = vld [vmem:[%s2895_s3 + $0x8] sm:$0xff] }
  0x7e   :  { %569 = vmatmul.f32.gmra.mxu0 %v2002_v27 }
  0x7f   :  { %398 = vmatmul.f32.gmra.mxu2 %v194_v44  ;;  %v2308_v44 = vand.u32 4294901760, %v725_v62 }
  0x81   :  { %v976_v6 = vsub.f32 %v725_v62, %v2308_v44 }
  0x85   :  { %513 = vmatmul.f32.gmra.mxu3 %v203_v7  ;;  %655 = vmatmul.f32.gmra.mxu1 %v2037_v45  ;;  %v2318_v7 = vand.u32 4294901760, %v724_v2 }
  0x86   :  { %573 = vmatmul.f32.gmra.mxu0 %v2037_v45 }
  0x87   :  { %403 = vmatmul.f32.gmra.mxu2 %v202_v58  ;;  %v971_v58 = vand.u32 4294901760, %v970_v38 }
  0x8a   :  { %v2168_v9 = vpop.f32.mrf.mxu1 }
  0x8b   :  { %v2166_v4 = vpop.f32.mrf.mxu0 }
  0x8d   :  { %519 = vmatmul.f32.gmra.mxu3 %v211_v25  ;;  %659 = vmatmul.f32.gmra.mxu1 %v2062_v60  ;;  %v730_v25 = vld [vmem:[%s2895_s3 + $0x38] sm:$0xff] }
  0x8e   :  { %577 = vmatmul.f32.gmra.mxu0 %v2062_v60 }
  0x8f   :  { %408 = vmatmul.f32.gmra.mxu2 %v1990_v18 }
  0x92   :  { %v2177_v27 = vpop.f32.mrf.mxu1  ;;  %v2188_v18 = vpop.f32.mrf.mxu2 }
  0x93   :  { %v2175_v15 = vpop.f32.mrf.mxu0 }
  0x95   :  { %525 = vmatmul.f32.gmra.mxu3 %v219_v32  ;;  %663 = vmatmul.f32.gmra.mxu1 %v2080_v5  ;;  %v2200_v32 = vpop.f32.mrf.mxu3 }
  0x96   :  { %581 = vmatmul.f32.gmra.mxu0 %v2080_v5 }
  0x97   :  { %413 = vmatmul.f32.gmra.mxu2 %v1998_v23  ;;  %v2198_v23 = vand.u32 4294901760, %v730_v25 }
  0x99   :  { %793 = vmatpush.msra.mxu2 %v2198_v23  ;;  %v2204_v60 = vsub.f32 %v730_v25, %v2198_v23  ;;  %1180 = vmatpush.msra.mxu1 %v2198_v23  ;;  %v972_v25 = vsub.f32 %v970_v38, %v971_v58 }
  0x9a   :  { %v2186_v11 = vpop.f32.mrf.mxu1  ;;  %v2218_v13 = vpop.f32.mrf.mxu2 }
  0x9b   :  { %v2184_v45 = vpop.f32.mrf.mxu0  ;;  %v947_v12 = vand.u32 4294901760, %v2204_v60  ;;  %1068 = vmatpush.msra.mxu0 %v2204_v60 }
  0x9d   :  { %531 = vmatmul.f32.gmra.mxu3 %v227_v48  ;;  %667 = vmatmul.f32.gmra.mxu1 %v2099_v20  ;;  %v948_v48 = vsub.f32 %v2204_v60, %v947_v12  ;;  %v2223_v19 = vpop.f32.mrf.mxu3 }
  0x9e   :  { %585 = vmatmul.f32.gmra.mxu0 %v2099_v20 }
  0x9f   :  { %418 = vmatmul.f32.gmra.mxu2 %v2030_v41  ;;  %v949_v14 = vand.u32 4294901760, %v948_v48  ;;  %v977_v48 = vand.u32 4294901760, %v976_v6 }
  0xa1   :  { %950 = vmatpush.msra.mxu3 %v949_v14 }
  0xa2   :  { %v2211_v41 = vpop.f32.mrf.mxu1 }
  0xa3   :  { %v2207_v5 = vpop.f32.mrf.mxu0 }
  0xa5   :  { %537 = vmatmul.f32.gmra.mxu3 %v235_v59  ;;  %671 = vmatmul.f32.gmra.mxu1 %v2115_v37  ;;  %v2236_v59 = vpop.f32.mrf.mxu2  ;;  %v2249_v35 = vpop.f32.mrf.mxu3 }
  0xa6   :  { %589 = vmatmul.f32.gmra.mxu0 %v2115_v37 }
  0xa7   :  { %423 = vmatmul.f32.gmra.mxu2 %v2055_v54  ;;  %v2234_v54 = vand.u32 4294901760, %v729_v26 }
  0xa9   :  { %795 = vmatpush.msra.mxu2 %v2234_v54  ;;  %v2240_v29 = vsub.f32 %v729_v26, %v2234_v54  ;;  %1182 = vmatpush.msra.mxu1 %v2234_v54  ;;  %v982_v26 = vsub.f32 %v724_v2, %v2318_v7 }
  0xaa   :  { %v2227_v21 = vpop.f32.mrf.mxu1 }
  0xab   :  { %v2225_v20 = vpop.f32.mrf.mxu0  ;;  %v953_v33 = vand.u32 4294901760, %v2240_v29  ;;  %1071 = vmatpush.msra.mxu0 %v2240_v29  ;;  %797 = vmatpush.msra.mxu2 %v2269_v24  ;;  %v983_v22 = vand.u32 4294901760, %v982_v26 }
  0xac   :  { %1184 = vmatpush.msra.mxu1 %v2269_v24 }
  0xad   :  { %675 = vmatmul.f32.gmra.mxu1 %v2126_v46  ;;  %v954_v36 = vsub.f32 %v2240_v29, %v953_v33  ;;  %v2256_v39 = vpop.f32.mrf.mxu2  ;;  %v2266_v17 = vpop.f32.mrf.mxu3  ;;  %799 = vmatpush.msra.mxu2 %v2279_v50 }
  0xae   :  { %593 = vmatmul.f32.gmra.mxu0 %v2126_v46  ;;  %v2273_v46 = vsub.f32 %v728_v43, %v2269_v24  ;;  %1186 = vmatpush.msra.mxu1 %v2279_v50  ;;  %v973_v43 = vand.u32 4294901760, %v972_v25 }
  0xaf   :  { %v955_v37 = vand.u32 4294901760, %v954_v36  ;;  %801 = vmatpush.msra.mxu2 %v2294_v56 }
  0xb0   :  { %v959_v52 = vand.u32 4294901760, %v2273_v46  ;;  %1074 = vmatpush.msra.mxu0 %v2273_v46  ;;  %1188 = vmatpush.msra.mxu1 %v2294_v56 }
  0xb1   :  { %956 = vmatpush.msra.mxu3 %v955_v37  ;;  %803 = vmatpush.msra.mxu2 %v2308_v44 }
  0xb2   :  { %v2247_v34 = vpop.f32.mrf.mxu1  ;;  %v960_v61 = vsub.f32 %v2273_v46, %v959_v52  ;;  %1190 = vmatpush.msra.mxu1 %v2308_v44 }
  0xb3   :  { %v2243_v30 = vpop.f32.mrf.mxu0  ;;  %805 = vmatpush.msra.mxu2 %v2318_v7 }
  0xb4   :  { %v961_v1 = vand.u32 4294901760, %v960_v61  ;;  %1192 = vmatpush.msra.mxu1 %v2318_v7 }
  0xb5   :  { %679 = vmatmul.f32.gmra.mxu1 %v2137_v55  ;;  %v2297_v57 = vpop.f32.mrf.mxu2  ;;  %v2322_v8 = vpop.f32.mrf.mxu3 }
  0xb6   :  { %597 = vmatmul.f32.gmra.mxu0 %v2137_v55  ;;  %v2291_v55 = vsub.f32 %v727_v47, %v2279_v50  ;;  %962 = vmatpush.msra.mxu3 %v961_v1  ;;  %v978_v47 = vsub.f32 %v976_v6, %v977_v48 }
  0xb8   :  { %1077 = vmatpush.msra.mxu0 %v2291_v55  ;;  %v979_v61 = vand.u32 4294901760, %v978_v47 }
  0xba   :  { %v2260_v42 = vpop.f32.mrf.mxu1  ;;  %1080 = vmatpush.msra.mxu0 %v970_v38  ;;  %v984_v38 = vsub.f32 %v982_v26, %v983_v22 }
  0xbb   :  { %v2258_v40 = vpop.f32.mrf.mxu0 }
  0xbc   :  { %1083 = vmatpush.msra.mxu0 %v976_v6  ;;  %v985_v2 = vand.u32 4294901760, %v984_v38 }
  0xbd   :  { %683 = vmatmul.f32.gmra.mxu1 %v2144_v63  ;;  %v354_v62 = vpop.f32.mrf.mxu2  ;;  %v454_v6 = vpop.f32.mrf.mxu3 }
  0xbe   :  { %601 = vmatmul.f32.gmra.mxu0 %v2144_v63  ;;  %v965_v63 = vand.u32 4294901760, %v2291_v55 }
  0xbf   :  { %1086 = vmatpush.msra.mxu0 %v982_v26 }
  0xc0   :  { %v966_v53 = vsub.f32 %v2291_v55, %v965_v63 }
  0xc2   :  { %v2288_v31 = vpop.f32.mrf.mxu1  ;;  %v967_v0 = vand.u32 4294901760, %v966_v53 }
  0xc3   :  { %v2281_v51 = vpop.f32.mrf.mxu0 }
  0xc4   :  { %968 = vmatpush.msra.mxu3 %v967_v0 }
  0xc5   :  { %687 = vmatmul.f32.gmra.mxu1 %v2151_v3 }
  0xc6   :  { %605 = vmatmul.f32.gmra.mxu0 %v2151_v3  ;;  %v723_v3 = vld [vmem:[%s2895_s3] sm:$0xff]  ;;  %974 = vmatpush.msra.mxu3 %v973_v43 }
  0xc7   :  { %v806_v36 = vand.u32 4294901760, %v723_v3 }
  0xc8   :  { %980 = vmatpush.msra.mxu3 %v979_v61 }
  0xc9   :  { %v988_v55 = vsub.f32 %v723_v3, %v806_v36  ;;  %1194 = vmatpush.msra.mxu1 %v806_v36  ;;  %807 = vmatpush.msra.mxu2 %v806_v36 }
  0xca   :  { %v2332_v37 = vpop.f32.mrf.mxu1  ;;  %986 = vmatpush.msra.mxu3 %v985_v2 }
  0xcb   :  { %v2329_v14 = vpop.f32.mrf.mxu0  ;;  %v989_v1 = vand.u32 4294901760, %v988_v55  ;;  %1089 = vmatpush.msra.mxu0 %v988_v55  ;;  %1303 = vmatpush.msrb.mxu2 %v947_v12  ;;  %v2357_v12 = vld [vmem:[%s2894_s2] ss:$0 sm:$0xff] }
  0xcd   :  { %691 = vmatmul.f32.gmra.mxu1 %v1975_v10  ;;  %v990_v53 = vsub.f32 %v988_v55, %v989_v1  ;;  %1307 = vmatpush.msrb.mxu2 %v953_v33 }
  0xce   :  { %609 = vmatmul.f32.gmra.mxu0 %v1975_v10  ;;  %v359_v10 = vpop.f32.mrf.mxu2 }
  0xcf   :  { %v991_v0 = vand.u32 4294901760, %v990_v53  ;;  %1311 = vmatpush.msrb.mxu2 %v959_v52 }
  0xd1   :  { %992 = vmatpush.msra.mxu3 %v991_v0  ;;  %1315 = vmatpush.msrb.mxu2 %v965_v63 }
  0xd2   :  { %v2343_v25 = vpop.f32.mrf.mxu1 }
  0xd3   :  { %v2339_v3 = vpop.f32.mrf.mxu0  ;;  %1406 = vmatpush.msrb.mxu3 %v2198_v23  ;;  %1319 = vmatpush.msrb.mxu2 %v971_v58  ;;  %v120_v23 = vadd.f32 %v2357_v12, %v2166_v4  ;;  %v128_v4 = vadd.f32 %v2357_v12, %v2175_v15 }
  0xd5   :  { %695 = vmatmul.f32.gmra.mxu1 %v1984_v16  ;;  %1408 = vmatpush.msrb.mxu3 %v2234_v54  ;;  %v270_v63 = vadd.f32 %v2177_v27, %v128_v4 }
  0xd6   :  { %613 = vmatmul.f32.gmra.mxu0 %v1984_v16  ;;  %1323 = vmatpush.msrb.mxu2 %v977_v48  ;;  %v460_v16 = vpop.f32.mrf.mxu3  ;;  %v364_v54 = vpop.f32.mrf.mxu2 }
  0xd7   :  { %1410 = vmatpush.msrb.mxu3 %v2269_v24  ;;  %v266_v24 = vadd.f32 %v2168_v9, %v120_v23 }
  0xd8   :  { %1327 = vmatpush.msrb.mxu2 %v983_v22 }
  0xd9   :  { %1412 = vmatpush.msrb.mxu3 %v2279_v50  ;;  %v350_v50 = vadd.f32 %v2297_v57, %v266_v24  ;;  %v136_v57 = vadd.f32 %v2357_v12, %v2184_v45 }
  0xda   :  { %v2359_v29 = vpop.f32.mrf.mxu1  ;;  %1331 = vmatpush.msrb.mxu2 %v989_v1  ;;  %v144_v1 = vadd.f32 %v2357_v12, %v2207_v5 }
  0xdb   :  { %v2352_v60 = vpop.f32.mrf.mxu0  ;;  %1414 = vmatpush.msrb.mxu3 %v2294_v56  ;;  %v449_v52 = vadd.f32 %v2322_v8, %v350_v50  ;;  %v274_v47 = vadd.f32 %v2186_v11, %v136_v57 }
  0xdd   :  { %699 = vmatmul.f32.gmra.mxu1 %v2004_v28  ;;  %1416 = vmatpush.msrb.mxu3 %v2308_v44  ;;  %v360_v61 = vadd.f32 %v359_v10, %v274_v47  ;;  %v278_v10 = vadd.f32 %v2211_v41, %v144_v1 }
  0xde   :  { %617 = vmatmul.f32.gmra.mxu0 %v2004_v28  ;;  %v466_v28 = vpop.f32.mrf.mxu3  ;;  %v369_v58 = vpop.f32.mrf.mxu2 }
  0xdf   :  { %1418 = vmatpush.msrb.mxu3 %v2318_v7  ;;  %v355_v7 = vadd.f32 %v354_v62, %v270_v63 }
  0xe1   :  { %1420 = vmatpush.msrb.mxu3 %v806_v36 }
  0xe2   :  { %v2372_v46 = vpop.f32.mrf.mxu1 }
  0xe3   :  { %v2369_v33 = vpop.f32.mrf.mxu0 }
  0xe5   :  { %703 = vmatmul.f32.gmra.mxu1 %v2040_v49 }
  0xe6   :  { %621 = vmatmul.f32.gmra.mxu0 %v2040_v49  ;;  %v472_v36 = vpop.f32.mrf.mxu3  ;;  %v455_v49 = vadd.f32 %v454_v6, %v355_v7  ;;  %v374_v38 = vpop.f32.mrf.mxu2  ;;  %v461_v6 = vadd.f32 %v460_v16, %v360_v61  ;;  %v160_v61 = vadd.f32 %v2357_v12, %v2243_v30 }
  0xea   :  { %v644_v9 = vpop.f32.mrf.mxu1 }
  0xeb   :  { %v562_v56 = vpop.f32.mrf.mxu0 }
  0xec   :  { %v563_v44 = vadd.f32 %v562_v56, %v449_v52  ;;  %v365_v56 = vadd.f32 %v364_v54, %v278_v10 }
  0xee   :  { %v645_v48 = vadd.f32 %v644_v9, %v563_v44  ;;  %v478_v0 = vpop.f32.mrf.mxu3  ;;  %v152_v44 = vadd.f32 %v2357_v12, %v2225_v20  ;;  %v379_v7 = vpop.f32.mrf.mxu2  ;;  %v467_v57 = vadd.f32 %v466_v28, %v365_v56 }
  0xf0   :  { %v707_v26 = vmax.f32 %v645_v48, 0.0 }
  0xf2   :  { %v737_v43 = vsel %vm735_vm1, %v707_v26, 0  ;;  %v648_v22 = vpop.f32.mrf.mxu1 }
  0xf3   :  { %v2384_v15 = vand.u32 4294901760, %v737_v43  ;;  %v566_v8 = vpop.f32.mrf.mxu0 }
  0xf4   :  { %v567_v27 = vadd.f32 %v566_v8, %v455_v49  ;;  %v282_v8 = vadd.f32 %v2227_v21, %v152_v44 }
  0xf5   :  { %v809_v55 = vsub.f32 %v737_v43, %v2384_v15  ;;  %994 = vmatmul.f32.vlgmr.msra.gmra.mxu3 %v2384_v15 }
  0xf6   :  { %v649_v62 = vadd.f32 %v648_v22, %v567_v27  ;;  %v484_v27 = vpop.f32.mrf.mxu3  ;;  %v370_v22 = vadd.f32 %v369_v58, %v282_v8 }
  0xf7   :  { %v810_v45 = vand.u32 4294901760, %v809_v55  ;;  %1092 = vmatmul.f32.vlgmr.msra.gmra.mxu0 %v809_v55 }
  0xf8   :  { %v708_v2 = vmax.f32 %v649_v62, 0.0  ;;  %v473_v1 = vadd.f32 %v472_v36, %v370_v22 }
  0xf9   :  { %1198 = vmatmul.f32.vlgmr.msra.gmra.mxu1 %v810_v45  ;;  %v811_v53 = vsub.f32 %v809_v55, %v810_v45 }
  0xfa   :  { %v740_v11 = vsel %vm735_vm1, %v708_v2, 0  ;;  %v652_v52 = vpop.f32.mrf.mxu1  ;;  %v384_v2 = vpop.f32.mrf.mxu2 }
  0xfb   :  { %v2392_v23 = vand.u32 4294901760, %v740_v11  ;;  %v570_v24 = vpop.f32.mrf.mxu0  ;;  %v812_v50 = vand.u32 4294901760, %v811_v53 }
  0xfc   :  { %v571_v4 = vadd.f32 %v570_v24, %v461_v6  ;;  %v286_v24 = vadd.f32 %v2247_v34, %v160_v61 }
  0xfd   :  { %813 = vmatmul.f32.vlgmr.msra.gmra.mxu2 %v812_v50  ;;  %998 = vmatmul.f32.gmra.mxu3 %v2392_v23  ;;  %v817_v5 = vsub.f32 %v740_v11, %v2392_v23 }
  0xfe   :  { %v653_v63 = vadd.f32 %v652_v52, %v571_v4  ;;  %v375_v10 = vadd.f32 %v374_v38, %v286_v24  ;;  %v490_v52 = vpop.f32.mrf.mxu3  ;;  %v184_v24 = vadd.f32 %v2357_v12, %v2329_v14 }
  0xff   :  { %1097 = vmatmul.f32.gmra.mxu0 %v817_v5  ;;  %v818_v16 = vand.u32 4294901760, %v817_v5 }
 0x100   :  { %v709_v9 = vmax.f32 %v653_v63, 0.0 }
 0x101   :  { %1204 = vmatmul.f32.gmra.mxu1 %v818_v16  ;;  %v819_v48 = vsub.f32 %v817_v5, %v818_v16  ;;  %v168_v5 = vadd.f32 %v2357_v12, %v2258_v40  ;;  %v479_v16 = vadd.f32 %v478_v0, %v375_v10 }
 0x102   :  { %v743_v41 = vsel %vm735_vm1, %v709_v9, 0  ;;  %v656_v47 = vpop.f32.mrf.mxu1 }
 0x103   :  { %v2400_v26 = vand.u32 4294901760, %v743_v41  ;;  %v574_v49 = vpop.f32.mrf.mxu0  ;;  %v820_v43 = vand.u32 4294901760, %v819_v48 }
 0x104   :  { %v575_v54 = vadd.f32 %v574_v49, %v467_v57  ;;  %v290_v57 = vadd.f32 %v2260_v42, %v168_v5  ;;  %v389_v49 = vpop.f32.mrf.mxu2 }
 0x105   :  { %821 = vmatmul.f32.gmra.mxu2 %v820_v43  ;;  %1002 = vmatmul.f32.gmra.mxu3 %v2400_v26  ;;  %v825_v20 = vsub.f32 %v743_v41, %v2400_v26 }
 0x106   :  { %v657_v55 = vadd.f32 %v656_v47, %v575_v54  ;;  %v380_v43 = vadd.f32 %v379_v7, %v290_v57  ;;  %v176_v54 = vadd.f32 %v2357_v12, %v2281_v51 }
 0x107   :  { %1102 = vmatmul.f32.gmra.mxu0 %v825_v20  ;;  %v826_v28 = vand.u32 4294901760, %v825_v20 }
 0x108   :  { %v710_v62 = vmax.f32 %v657_v55, 0.0  ;;  %v485_v42 = vadd.f32 %v484_v27, %v380_v43 }
 0x109   :  { %1210 = vmatmul.f32.gmra.mxu1 %v826_v28  ;;  %v827_v45 = vsub.f32 %v825_v20, %v826_v28  ;;  %v496_v20 = vpop.f32.mrf.mxu3 }
 0x10a   :  { %v746_v21 = vsel %vm735_vm1, %v710_v62, 0  ;;  %v660_v50 = vpop.f32.mrf.mxu1 }
 0x10b   :  { %v2408_v53 = vand.u32 4294901760, %v746_v21  ;;  %v578_v6 = vpop.f32.mrf.mxu0  ;;  %v828_v11 = vand.u32 4294901760, %v827_v45  ;;  %v294_v45 = vadd.f32 %v2288_v31, %v176_v54 }
 0x10c   :  { %v579_v58 = vadd.f32 %v578_v6, %v473_v1 }
 0x10d   :  { %829 = vmatmul.f32.gmra.mxu2 %v828_v11  ;;  %1006 = vmatmul.f32.gmra.mxu3 %v2408_v53  ;;  %v833_v30 = vsub.f32 %v746_v21, %v2408_v53  ;;  %v385_v21 = vadd.f32 %v384_v2, %v294_v45  ;;  %v394_v11 = vpop.f32.mrf.mxu2  ;;  %v298_v2 = vadd.f32 %v2332_v37, %v184_v24 }
 0x10e   :  { %v661_v4 = vadd.f32 %v660_v50, %v579_v58 }
 0x10f   :  { %1107 = vmatmul.f32.gmra.mxu0 %v833_v30  ;;  %v834_v36 = vand.u32 4294901760, %v833_v30 }
 0x110   :  { %v711_v56 = vmax.f32 %v661_v4, 0.0 }
 0x111   :  { %1216 = vmatmul.f32.gmra.mxu1 %v834_v36  ;;  %v835_v63 = vsub.f32 %v833_v30, %v834_v36  ;;  %v491_v30 = vadd.f32 %v490_v52, %v385_v21  ;;  %v502_v10 = vpop.f32.mrf.mxu3 }
 0x112   :  { %v749_v34 = vsel %vm735_vm1, %v711_v56, 0  ;;  %v664_v41 = vpop.f32.mrf.mxu1 }
 0x113   :  { %v2416_v44 = vand.u32 4294901760, %v749_v34  ;;  %v582_v9 = vpop.f32.mrf.mxu0  ;;  %v836_v48 = vand.u32 4294901760, %v835_v63 }
 0x114   :  { %v583_v38 = vadd.f32 %v582_v9, %v479_v16  ;;  %v390_v16 = vadd.f32 %v389_v49, %v298_v2  ;;  %v192_v9 = vadd.f32 %v2357_v12, %v2339_v3 }
 0x115   :  { %837 = vmatmul.f32.gmra.mxu2 %v836_v48  ;;  %1010 = vmatmul.f32.gmra.mxu3 %v2416_v44  ;;  %v841_v40 = vsub.f32 %v749_v34, %v2416_v44  ;;  %v399_v57 = vpop.f32.mrf.mxu2 }
 0x116   :  { %v665_v8 = vadd.f32 %v664_v41, %v583_v38  ;;  %v497_v41 = vadd.f32 %v496_v20, %v390_v16 }
 0x117   :  { %1112 = vmatmul.f32.gmra.mxu0 %v841_v40  ;;  %v842_v0 = vand.u32 4294901760, %v841_v40 }
 0x118   :  { %v712_v47 = vmax.f32 %v665_v8, 0.0 }
 0x119   :  { %1222 = vmatmul.f32.gmra.mxu1 %v842_v0  ;;  %v843_v22 = vsub.f32 %v841_v40, %v842_v0  ;;  %v302_v0 = vadd.f32 %v2343_v25, %v192_v9 }
 0x11a   :  { %v752_v55 = vsel %vm735_vm1, %v712_v47, 0  ;;  %v668_v1 = vpop.f32.mrf.mxu1  ;;  %v508_v47 = vpop.f32.mrf.mxu3 }
 0x11b   :  { %v2424_v28 = vand.u32 4294901760, %v752_v55  ;;  %v586_v61 = vpop.f32.mrf.mxu0  ;;  %v844_v62 = vand.u32 4294901760, %v843_v22  ;;  %v395_v22 = vadd.f32 %v394_v11, %v302_v0 }
 0x11c   :  { %v587_v7 = vadd.f32 %v586_v61, %v485_v42 }
 0x11d   :  { %845 = vmatmul.f32.gmra.mxu2 %v844_v62  ;;  %1014 = vmatmul.f32.gmra.mxu3 %v2424_v28  ;;  %v849_v51 = vsub.f32 %v752_v55, %v2424_v28  ;;  %v200_v55 = vadd.f32 %v2357_v12, %v2352_v60  ;;  %v503_v45 = vadd.f32 %v502_v10, %v395_v22 }
 0x11e   :  { %v669_v6 = vadd.f32 %v668_v1, %v587_v7  ;;  %v404_v7 = vpop.f32.mrf.mxu2 }
 0x11f   :  { %1117 = vmatmul.f32.gmra.mxu0 %v849_v51  ;;  %v850_v27 = vand.u32 4294901760, %v849_v51 }
 0x120   :  { %v713_v58 = vmax.f32 %v669_v6, 0.0  ;;  %v306_v6 = vadd.f32 %v2359_v29, %v200_v55 }
 0x121   :  { %1228 = vmatmul.f32.gmra.mxu1 %v850_v27  ;;  %v851_v50 = vsub.f32 %v849_v51, %v850_v27 }
 0x122   :  { %v755_v31 = vsel %vm735_vm1, %v713_v58, 0  ;;  %v672_v63 = vpop.f32.mrf.mxu1  ;;  %v400_v24 = vadd.f32 %v399_v57, %v306_v6 }
 0x123   :  { %v2432_v4 = vand.u32 4294901760, %v755_v31  ;;  %v590_v36 = vpop.f32.mrf.mxu0  ;;  %v852_v5 = vand.u32 4294901760, %v851_v50  ;;  %v514_v50 = vpop.f32.mrf.mxu3 }
 0x124   :  { %v591_v56 = vadd.f32 %v590_v36, %v491_v30 }
 0x125   :  { %853 = vmatmul.f32.gmra.mxu2 %v852_v5  ;;  %1018 = vmatmul.f32.gmra.mxu3 %v2432_v4  ;;  %v857_v14 = vsub.f32 %v755_v31, %v2432_v4  ;;  %v208_v31 = vadd.f32 %v2357_v12, %v2369_v33  ;;  %v509_v5 = vadd.f32 %v508_v47, %v400_v24 }
 0x126   :  { %v673_v34 = vadd.f32 %v672_v63, %v591_v56 }
 0x127   :  { %1122 = vmatmul.f32.gmra.mxu0 %v857_v14  ;;  %v858_v52 = vand.u32 4294901760, %v857_v14 }
 0x128   :  { %v714_v48 = vmax.f32 %v673_v34, 0.0 }
 0x129   :  { %1234 = vmatmul.f32.gmra.mxu1 %v858_v52  ;;  %v859_v38 = vsub.f32 %v857_v14, %v858_v52  ;;  %v310_v14 = vadd.f32 %v2372_v46, %v208_v31  ;;  %v409_v52 = vpop.f32.mrf.mxu2  ;;  %v232_v31 = vadd.f32 %v2357_v12, %v2236_v59 }
 0x12a   :  { %v758_v37 = vsel %vm735_vm1, %v714_v48, 0  ;;  %v676_v54 = vpop.f32.mrf.mxu1 }
 0x12b   :  { %v2440_v40 = vand.u32 4294901760, %v758_v37  ;;  %v594_v43 = vpop.f32.mrf.mxu0  ;;  %v860_v8 = vand.u32 4294901760, %v859_v38  ;;  %v405_v9 = vadd.f32 %v404_v7, %v310_v14  ;;  %v216_v38 = vadd.f32 %v2357_v12, %v2188_v18 }
 0x12c   :  { %v595_v49 = vadd.f32 %v594_v43, %v497_v41 }
 0x12d   :  { %861 = vmatmul.f32.gmra.mxu2 %v860_v8  ;;  %1022 = vmatmul.f32.gmra.mxu3 %v2440_v40  ;;  %v865_v3 = vsub.f32 %v758_v37, %v2440_v40  ;;  %v520_v37 = vpop.f32.mrf.mxu3  ;;  %v515_v46 = vadd.f32 %v514_v50, %v405_v9  ;;  %v314_v47 = vadd.f32 %v2200_v32, %v216_v38 }
 0x12e   :  { %v677_v42 = vadd.f32 %v676_v54, %v595_v49  ;;  %v240_v38 = vadd.f32 %v2357_v12, %v2256_v39 }
 0x12f   :  { %1127 = vmatmul.f32.gmra.mxu0 %v865_v3  ;;  %v866_v20 = vand.u32 4294901760, %v865_v3 }
 0x130   :  { %v715_v61 = vmax.f32 %v677_v42, 0.0  ;;  %v410_v42 = vadd.f32 %v409_v52, %v314_v47  ;;  %v326_v47 = vadd.f32 %v2266_v17, %v240_v38 }
 0x131   :  { %1240 = vmatmul.f32.gmra.mxu1 %v866_v20  ;;  %v867_v62 = vsub.f32 %v865_v3, %v866_v20  ;;  %v414_v55 = vpop.f32.mrf.mxu2 }
 0x132   :  { %v761_v25 = vsel %vm735_vm1, %v715_v61, 0  ;;  %v680_v27 = vpop.f32.mrf.mxu1  ;;  %v521_v7 = vadd.f32 %v520_v37, %v410_v42 }
 0x133   :  { %v2448_v1 = vand.u32 4294901760, %v761_v25  ;;  %v598_v51 = vpop.f32.mrf.mxu0  ;;  %v868_v21 = vand.u32 4294901760, %v867_v62  ;;  %v224_v62 = vadd.f32 %v2357_v12, %v2218_v13 }
 0x134   :  { %v599_v11 = vadd.f32 %v598_v51, %v503_v45 }
 0x135   :  { %869 = vmatmul.f32.gmra.mxu2 %v868_v21  ;;  %1026 = vmatmul.f32.gmra.mxu3 %v2448_v1  ;;  %v873_v60 = vsub.f32 %v761_v25, %v2448_v1  ;;  %v526_v51 = vpop.f32.mrf.mxu3 }
 0x136   :  { %v681_v58 = vadd.f32 %v680_v27, %v599_v11  ;;  %v318_v27 = vadd.f32 %v2223_v19, %v224_v62 }
 0x137   :  { %1132 = vmatmul.f32.gmra.mxu0 %v873_v60  ;;  %v874_v30 = vand.u32 4294901760, %v873_v60 }
 0x138   :  { %v716_v10 = vmax.f32 %v681_v58, 0.0  ;;  %v415_v58 = vadd.f32 %v414_v55, %v318_v27 }
 0x139   :  { %1246 = vmatmul.f32.gmra.mxu1 %v874_v30  ;;  %v875_v36 = vsub.f32 %v873_v60, %v874_v30 }
 0x13a   :  { %v764_v29 = vsel %vm735_vm1, %v716_v10, 0  ;;  %v684_v34 = vpop.f32.mrf.mxu1 }
 0x13b   :  { %v2456_v2 = vand.u32 4294901760, %v764_v29  ;;  %v602_v56 = vpop.f32.mrf.mxu0  ;;  %v876_v63 = vand.u32 4294901760, %v875_v36  ;;  %v419_v36 = vpop.f32.mrf.mxu2 }
 0x13c   :  { %v603_v16 = vadd.f32 %v602_v56, %v509_v5 }
 0x13d   :  { %877 = vmatmul.f32.gmra.mxu2 %v876_v63  ;;  %1030 = vmatmul.f32.gmra.mxu3 %v2456_v2  ;;  %v881_v33 = vsub.f32 %v764_v29, %v2456_v2  ;;  %v527_v29 = vadd.f32 %v526_v51, %v415_v58 }
 0x13e   :  { %v685_v48 = vadd.f32 %v684_v34, %v603_v16  ;;  %v322_v16 = vadd.f32 %v2249_v35, %v232_v31 }
 0x13f   :  { %1137 = vmatmul.f32.gmra.mxu0 %v881_v33  ;;  %v882_v57 = vand.u32 4294901760, %v881_v33 }
 0x140   :  { %v717_v41 = vmax.f32 %v685_v48, 0.0  ;;  %v420_v9 = vadd.f32 %v419_v36, %v322_v16 }
 0x141   :  { %1252 = vmatmul.f32.gmra.mxu1 %v882_v57  ;;  %v883_v43 = vsub.f32 %v881_v33, %v882_v57  ;;  %v532_v33 = vpop.f32.mrf.mxu3 }
 0x142   :  { %v767_v8 = vsel %vm735_vm1, %v717_v41, 0  ;;  %v688_v22 = vpop.f32.mrf.mxu1 }
 0x143   :  { %v2464_v0 = vand.u32 4294901760, %v767_v8  ;;  %v606_v49 = vpop.f32.mrf.mxu0  ;;  %v884_v54 = vand.u32 4294901760, %v883_v43  ;;  %v533_v43 = vadd.f32 %v532_v33, %v420_v9 }
 0x144   :  { %v607_v3 = vadd.f32 %v606_v49, %v515_v46  ;;  %v424_v46 = vpop.f32.mrf.mxu2 }
 0x145   :  { %885 = vmatmul.f32.gmra.mxu2 %v884_v54  ;;  %1034 = vmatmul.f32.gmra.mxu3 %v2464_v0  ;;  %v889_v18 = vsub.f32 %v767_v8, %v2464_v0  ;;  %v425_v12 = vadd.f32 %v424_v46, %v326_v47 }
 0x146   :  { %v689_v20 = vadd.f32 %v688_v22, %v607_v3 }
 0x147   :  { %1142 = vmatmul.f32.gmra.mxu0 %v889_v18  ;;  %v890_v61 = vand.u32 4294901760, %v889_v18 }
 0x148   :  { %v718_v45 = vmax.f32 %v689_v20, 0.0 }
 0x149   :  { %1258 = vmatmul.f32.gmra.mxu1 %v890_v61  ;;  %v891_v25 = vsub.f32 %v889_v18, %v890_v61  ;;  %v538_v42 = vpop.f32.mrf.mxu3 }
 0x14a   :  { %v770_v32 = vsel %vm735_vm1, %v718_v45, 0  ;;  %v692_v24 = vpop.f32.mrf.mxu1  ;;  %v539_v62 = vadd.f32 %v538_v42, %v425_v12 }
 0x14b   :  { %v2472_v21 = vand.u32 4294901760, %v770_v32  ;;  %v610_v6 = vpop.f32.mrf.mxu0  ;;  %v892_v11 = vand.u32 4294901760, %v891_v25 }
 0x14c   :  { %v611_v60 = vadd.f32 %v610_v6, %v521_v7 }
 0x14d   :  { %893 = vmatmul.f32.gmra.mxu2 %v892_v11  ;;  %1038 = vmatmul.f32.gmra.mxu3 %v2472_v21  ;;  %v897_v13 = vsub.f32 %v770_v32, %v2472_v21 }
 0x14e   :  { %v693_v50 = vadd.f32 %v692_v24, %v611_v60 }
 0x14f   :  { %1147 = vmatmul.f32.gmra.mxu0 %v897_v13  ;;  %v898_v30 = vand.u32 4294901760, %v897_v13 }
 0x150   :  { %v719_v10 = vmax.f32 %v693_v50, 0.0 }
 0x151   :  { %1264 = vmatmul.f32.gmra.mxu1 %v898_v30  ;;  %v899_v5 = vsub.f32 %v897_v13, %v898_v30 }
 0x152   :  { %v773_v19 = vsel %vm735_vm1, %v719_v10, 0  ;;  %v696_v52 = vpop.f32.mrf.mxu1 }
 0x153   :  { %v2480_v56 = vand.u32 4294901760, %v773_v19  ;;  %v614_v63 = vpop.f32.mrf.mxu0  ;;  %v900_v14 = vand.u32 4294901760, %v899_v5 }
 0x154   :  { %v615_v34 = vadd.f32 %v614_v63, %v527_v29 }
 0x155   :  { %901 = vmatmul.f32.gmra.mxu2 %v900_v14  ;;  %1042 = vmatmul.f32.gmra.mxu3 %v2480_v56  ;;  %v905_v59 = vsub.f32 %v773_v19, %v2480_v56  ;;  %v2509_v14 = vld [vmem:[%s2896_s4] ss:$0 sm:$0xff] }
 0x156   :  { %v697_v48 = vadd.f32 %v696_v52, %v615_v34 }
 0x157   :  { %1152 = vmatmul.f32.gmra.mxu0 %v905_v59  ;;  %v906_v57 = vand.u32 4294901760, %v905_v59 }
 0x158   :  { %v720_v41 = vmax.f32 %v697_v48, 0.0 }
 0x159   :  { %1270 = vmatmul.f32.gmra.mxu1 %v906_v57  ;;  %v907_v37 = vsub.f32 %v905_v59, %v906_v57 }
 0x15a   :  { %v776_v35 = vsel %vm735_vm1, %v720_v41, 0  ;;  %v700_v22 = vpop.f32.mrf.mxu1 }
 0x15b   :  { %v2488_v8 = vand.u32 4294901760, %v776_v35  ;;  %v618_v49 = vpop.f32.mrf.mxu0  ;;  %v908_v54 = vand.u32 4294901760, %v907_v37 }
 0x15c   :  { %v619_v3 = vadd.f32 %v618_v49, %v533_v43 }
 0x15d   :  { %909 = vmatmul.f32.gmra.mxu2 %v908_v54  ;;  %1046 = vmatmul.f32.gmra.mxu3 %v2488_v8  ;;  %v913_v39 = vsub.f32 %v776_v35, %v2488_v8 }
 0x15e   :  { %v701_v18 = vadd.f32 %v700_v22, %v619_v3 }
 0x15f   :  { %1157 = vmatmul.f32.gmra.mxu0 %v913_v39  ;;  %v914_v20 = vand.u32 4294901760, %v913_v39 }
 0x160   :  { %v721_v55 = vmax.f32 %v701_v18, 0.0 }
 0x161   :  { %1276 = vmatmul.f32.gmra.mxu1 %v914_v20  ;;  %v915_v61 = vsub.f32 %v913_v39, %v914_v20 }
 0x162   :  { %v779_v45 = vsel %vm735_vm1, %v721_v55, 0  ;;  %v704_v51 = vpop.f32.mrf.mxu1 }
 0x163   :  { %v2494_v25 = vand.u32 4294901760, %v779_v45  ;;  %v622_v17 = vpop.f32.mrf.mxu0  ;;  %v916_v7 = vand.u32 4294901760, %v915_v61 }
 0x164   :  { %v623_v32 = vadd.f32 %v622_v17, %v539_v62 }
 0x165   :  { %917 = vmatmul.f32.gmra.mxu2 %v916_v7  ;;  %1050 = vmatmul.f32.gmra.mxu3 %v2494_v25  ;;  %v921_v6 = vsub.f32 %v779_v45, %v2494_v25 }
 0x166   :  { %v705_v11 = vadd.f32 %v704_v51, %v623_v32 }
 0x167   :  { %1162 = vmatmul.f32.gmra.mxu0 %v921_v6  ;;  %v922_v27 = vand.u32 4294901760, %v921_v6 }
 0x168   :  { %v722_v60 = vmax.f32 %v705_v11, 0.0 }
 0x169   :  { %1282 = vmatmul.f32.gmra.mxu1 %v922_v27  ;;  %v923_v24 = vsub.f32 %v921_v6, %v922_v27 }
 0x16a   :  { %v782_v13 = vsel %vm735_vm1, %v722_v60, 0 }
 0x16b   :  { %v2499_v58 = vand.u32 4294901760, %v782_v13  ;;  %v924_v50 = vand.u32 4294901760, %v923_v24 }
 0x16d   :  { %925 = vmatmul.f32.gmra.mxu2 %v924_v50  ;;  %1054 = vmatmul.f32.gmra.mxu3 %v2499_v58  ;;  %v929_v30 = vsub.f32 %v782_v13, %v2499_v58 }
 0x16f   :  { %1167 = vmatmul.f32.gmra.mxu0 %v929_v30  ;;  %v930_v31 = vand.u32 4294901760, %v929_v30 }
 0x171   :  { %1288 = vmatmul.f32.gmra.mxu1 %v930_v31  ;;  %v931_v10 = vsub.f32 %v929_v30, %v930_v31 }
 0x173   :  { %v932_v36 = vand.u32 4294901760, %v931_v10 }
 0x174   :  { %v1093_v5 = vpop.f32.mrf.mxu0 }
 0x175   :  { %933 = vmatmul.f32.gmra.mxu2 %v932_v36  ;;  %1422 = vmatmul.f32.vlgmr.msrb.gmra.mxu3 %v2384_v15 }
 0x176   :  { %v1199_v29 = vpop.f32.mrf.mxu1 }
 0x178   :  { %v995_v19 = vpop.f32.mrf.mxu3 }
 0x17c   :  { %v1098_v63 = vpop.f32.mrf.mxu0 }
 0x17d   :  { %1333 = vmatmul.f32.vlgmr.msrb.gmra.mxu2 %v2384_v15  ;;  %1426 = vmatmul.f32.gmra.mxu3 %v2392_v23 }
 0x17e   :  { %v1205_v16 = vpop.f32.mrf.mxu1 }
 0x180   :  { %v814_v34 = vpop.f32.mrf.mxu2  ;;  %v999_v52 = vpop.f32.mrf.mxu3 }
 0x181   :  { %v815_v33 = vadd.f32 %v2509_v14, %v814_v34 }
 0x183   :  { %v996_v59 = vadd.f32 %v995_v19, %v815_v33 }
 0x184   :  { %v1103_v9 = vpop.f32.mrf.mxu0 }
 0x185   :  { %1337 = vmatmul.f32.gmra.mxu2 %v2392_v23  ;;  %1430 = vmatmul.f32.gmra.mxu3 %v2400_v26  ;;  %v1094_v48 = vadd.f32 %v1093_v5, %v996_v59 }
 0x186   :  { %v1211_v15 = vpop.f32.mrf.mxu1 }
 0x187   :  { %v2514_v57 = vadd.f32 %v1199_v29, %v1094_v48 }
 0x188   :  { %v822_v38 = vpop.f32.mrf.mxu2  ;;  %v1003_v41 = vpop.f32.mrf.mxu3 }
 0x189   :  { %v823_v37 = vadd.f32 %v2509_v14, %v822_v38 }
 0x18b   :  { %v1000_v43 = vadd.f32 %v999_v52, %v823_v37 }
 0x18c   :  { %v1108_v46 = vpop.f32.mrf.mxu0 }
 0x18d   :  { %1341 = vmatmul.f32.gmra.mxu2 %v2400_v26  ;;  %1434 = vmatmul.f32.gmra.mxu3 %v2408_v53  ;;  %v1099_v35 = vadd.f32 %v1098_v63, %v1000_v43 }
 0x18e   :  { %v1217_v47 = vpop.f32.mrf.mxu1 }
 0x18f   :  { %v2519_v49 = vadd.f32 %v1205_v16, %v1099_v35 }
 0x190   :  { %v830_v23 = vpop.f32.mrf.mxu2  ;;  %v1007_v54 = vpop.f32.mrf.mxu3 }
 0x191   :  { %v831_v3 = vadd.f32 %v2509_v14, %v830_v23 }
 0x193   :  { %v1004_v22 = vadd.f32 %v1003_v41, %v831_v3 }
 0x194   :  { %v1113_v42 = vpop.f32.mrf.mxu0 }
 0x195   :  { %1345 = vmatmul.f32.gmra.mxu2 %v2408_v53  ;;  %1438 = vmatmul.f32.gmra.mxu3 %v2416_v44  ;;  %v1104_v39 = vadd.f32 %v1103_v9, %v1004_v22 }
 0x196   :  { %v1223_v55 = vpop.f32.mrf.mxu1 }
 0x197   :  { %v2524_v12 = vadd.f32 %v1211_v15, %v1104_v39 }
 0x198   :  { %v838_v26 = vpop.f32.mrf.mxu2  ;;  %v1011_v18 = vpop.f32.mrf.mxu3 }
 0x199   :  { %v839_v20 = vadd.f32 %v2509_v14, %v838_v26 }
 0x19b   :  { %v1008_v61 = vadd.f32 %v1007_v54, %v839_v20 }
 0x19c   :  { %v1118_v32 = vpop.f32.mrf.mxu0 }
 0x19d   :  { %1349 = vmatmul.f32.gmra.mxu2 %v2416_v44  ;;  %1442 = vmatmul.f32.gmra.mxu3 %v2424_v28  ;;  %v1109_v62 = vadd.f32 %v1108_v46, %v1008_v61 }
 0x19e   :  { %v1229_v6 = vpop.f32.mrf.mxu1 }
 0x19f   :  { %v2529_v45 = vadd.f32 %v1217_v47, %v1109_v62 }
 0x1a0   :  { %v846_v53 = vpop.f32.mrf.mxu2  ;;  %v1015_v17 = vpop.f32.mrf.mxu3 }
 0x1a1   :  { %v847_v7 = vadd.f32 %v2509_v14, %v846_v53 }
 0x1a3   :  { %v1012_v51 = vadd.f32 %v1011_v18, %v847_v7 }
 0x1a4   :  { %v1123_v50 = vpop.f32.mrf.mxu0 }
 0x1a5   :  { %1353 = vmatmul.f32.gmra.mxu2 %v2424_v28  ;;  %1446 = vmatmul.f32.gmra.mxu3 %v2432_v4  ;;  %v1114_v11 = vadd.f32 %v1113_v42, %v1012_v51 }
 0x1a6   :  { %v1235_v31 = vpop.f32.mrf.mxu1 }
 0x1a7   :  { %v2534_v27 = vadd.f32 %v1223_v55, %v1114_v11 }
 0x1a8   :  { %v854_v44 = vpop.f32.mrf.mxu2  ;;  %v1019_v60 = vpop.f32.mrf.mxu3 }
 0x1a9   :  { %v855_v24 = vadd.f32 %v2509_v14, %v854_v44 }
 0x1ab   :  { %v1016_v13 = vadd.f32 %v1015_v17, %v855_v24 }
 0x1ac   :  { %v1128_v63 = vpop.f32.mrf.mxu0 }
 0x1ad   :  { %1357 = vmatmul.f32.gmra.mxu2 %v2432_v4  ;;  %1450 = vmatmul.f32.gmra.mxu3 %v2440_v40  ;;  %v1119_v30 = vadd.f32 %v1118_v32, %v1016_v13 }
 0x1ae   :  { %v1241_v33 = vpop.f32.mrf.mxu1 }
 0x1af   :  { %v2539_v10 = vadd.f32 %v1229_v6, %v1119_v30 }
 0x1b0   :  { %v862_v28 = vpop.f32.mrf.mxu2  ;;  %v1023_v36 = vpop.f32.mrf.mxu3 }
 0x1b1   :  { %v863_v5 = vadd.f32 %v2509_v14, %v862_v28 }
 0x1b3   :  { %v1020_v29 = vadd.f32 %v1019_v60, %v863_v5 }
 0x1b4   :  { %v1133_v41 = vpop.f32.mrf.mxu0 }
 0x1b5   :  { %1361 = vmatmul.f32.gmra.mxu2 %v2440_v40  ;;  %1454 = vmatmul.f32.gmra.mxu3 %v2448_v1  ;;  %v1124_v19 = vadd.f32 %v1123_v50, %v1020_v29 }
 0x1b6   :  { %v1247_v43 = vpop.f32.mrf.mxu1 }
 0x1b7   :  { %v2544_v16 = vadd.f32 %v1235_v31, %v1124_v19 }
 0x1b8   :  { %v870_v4 = vpop.f32.mrf.mxu2  ;;  %v1027_v34 = vpop.f32.mrf.mxu3 }
 0x1b9   :  { %v871_v52 = vadd.f32 %v2509_v14, %v870_v4 }
 0x1bb   :  { %v1024_v59 = vadd.f32 %v1023_v36, %v871_v52 }
 0x1bc   :  { %v1138_v3 = vpop.f32.mrf.mxu0 }
 0x1bd   :  { %1365 = vmatmul.f32.gmra.mxu2 %v2448_v1  ;;  %1458 = vmatmul.f32.gmra.mxu3 %v2456_v2  ;;  %v1129_v9 = vadd.f32 %v1128_v63, %v1024_v59 }
 0x1be   :  { %v1253_v39 = vpop.f32.mrf.mxu1 }
 0x1bf   :  { %v2549_v48 = vadd.f32 %v1241_v33, %v1129_v9 }
 0x1c0   :  { %v878_v40 = vpop.f32.mrf.mxu2  ;;  %v1031_v15 = vpop.f32.mrf.mxu3 }
 0x1c1   :  { %v879_v38 = vadd.f32 %v2509_v14, %v878_v40 }
 0x1c3   :  { %v1028_v37 = vadd.f32 %v1027_v34, %v879_v38 }
 0x1c5   :  { %1369 = vmatmul.f32.gmra.mxu2 %v2456_v2  ;;  %1462 = vmatmul.f32.gmra.mxu3 %v2464_v0  ;;  %v1134_v35 = vadd.f32 %v1133_v41, %v1028_v37 }
 0x1c7   :  { %v2554_v46 = vadd.f32 %v1247_v43, %v1134_v35 }
 0x1c8   :  { %v886_v1 = vpop.f32.mrf.mxu2  ;;  %v1035_v23 = vpop.f32.mrf.mxu3 }
 0x1c9   :  { %v887_v54 = vadd.f32 %v2509_v14, %v886_v1 }
 0x1cb   :  { %v1032_v47 = vadd.f32 %v1031_v15, %v887_v54 }
 0x1cd   :  { %1373 = vmatmul.f32.gmra.mxu2 %v2464_v0  ;;  %1466 = vmatmul.f32.gmra.mxu3 %v2472_v21  ;;  %v1139_v22 = vadd.f32 %v1138_v3, %v1032_v47 }
 0x1cf   :  { %v2559_v26 = vadd.f32 %v1253_v39, %v1139_v22 }
 0x1d0   :  { %v894_v2 = vpop.f32.mrf.mxu2  ;;  %v1039_v18 = vpop.f32.mrf.mxu3 }
 0x1d1   :  { %v895_v42 = vadd.f32 %v2509_v14, %v894_v2 }
 0x1d3   :  { %v2562_v20 = vadd.f32 %v1035_v23, %v895_v42 }
 0x1d5   :  { %1377 = vmatmul.f32.gmra.mxu2 %v2472_v21  ;;  %1470 = vmatmul.f32.gmra.mxu3 %v2480_v56 }
 0x1d8   :  { %v902_v55 = vpop.f32.mrf.mxu2  ;;  %v1043_v61 = vpop.f32.mrf.mxu3 }
 0x1d9   :  { %v903_v0 = vadd.f32 %v2509_v14, %v902_v55 }
 0x1db   :  { %v2567_v62 = vadd.f32 %v1039_v18, %v903_v0  ;;  %v1259_v18 = vpop.f32.mrf.mxu1 }
 0x1dd   :  { %1381 = vmatmul.f32.gmra.mxu2 %v2480_v56  ;;  %1474 = vmatmul.f32.gmra.mxu3 %v2488_v8 }
 0x1e0   :  { %v910_v53 = vpop.f32.mrf.mxu2  ;;  %v1047_v17 = vpop.f32.mrf.mxu3 }
 0x1e1   :  { %v911_v7 = vadd.f32 %v2509_v14, %v910_v53 }
 0x1e3   :  { %v2572_v32 = vadd.f32 %v1043_v61, %v911_v7  ;;  %v1265_v53 = vpop.f32.mrf.mxu1 }
 0x1e5   :  { %1385 = vmatmul.f32.gmra.mxu2 %v2488_v8  ;;  %1478 = vmatmul.f32.gmra.mxu3 %v2494_v25 }
 0x1e8   :  { %v918_v21 = vpop.f32.mrf.mxu2  ;;  %v1051_v51 = vpop.f32.mrf.mxu3 }
 0x1e9   :  { %v919_v6 = vadd.f32 %v2509_v14, %v918_v21 }
 0x1eb   :  { %v2577_v11 = vadd.f32 %v1047_v17, %v919_v6  ;;  %v1271_v21 = vpop.f32.mrf.mxu1 }
 0x1ed   :  { %1389 = vmatmul.f32.gmra.mxu2 %v2494_v25  ;;  %1482 = vmatmul.f32.gmra.mxu3 %v2499_v58 }
 0x1f0   :  { %v926_v56 = vpop.f32.mrf.mxu2  ;;  %v1055_v44 = vpop.f32.mrf.mxu3 }
 0x1f1   :  { %v927_v60 = vadd.f32 %v2509_v14, %v926_v56 }
 0x1f3   :  { %v2582_v24 = vadd.f32 %v1051_v51, %v927_v60 }
 0x1f5   :  { %1393 = vmatmul.f32.gmra.mxu2 %v2499_v58 }
 0x1f8   :  { %v934_v8 = vpop.f32.mrf.mxu2  ;;  %v1423_v13 = vpop.f32.mrf.mxu3 }
 0x1f9   :  { %v935_v50 = vadd.f32 %v2509_v14, %v934_v8 }
 0x1fb   :  { %v2586_v30 = vadd.f32 %v1055_v44, %v935_v50 }
 0x200   :  { %v1334_v31 = vpop.f32.mrf.mxu2  ;;  %v1427_v28 = vpop.f32.mrf.mxu3 }
 0x201   :  { %v1335_v25 = vadd.f32 %v1334_v31, %v2514_v57 }
 0x203   :  { %v2589_v36 = vadd.f32 %v1423_v13, %v1335_v25 }
 0x208   :  { %v1338_v5 = vpop.f32.mrf.mxu2  ;;  %v1431_v29 = vpop.f32.mrf.mxu3 }
 0x209   :  { %v1339_v19 = vadd.f32 %v1338_v5, %v2519_v49 }
 0x20b   :  { %v2592_v63 = vadd.f32 %v1427_v28, %v1339_v19 }
 0x210   :  { %v1342_v4 = vpop.f32.mrf.mxu2  ;;  %v1435_v58 = vpop.f32.mrf.mxu3 }
 0x211   :  { %v1343_v34 = vadd.f32 %v1342_v4, %v2524_v12 }
 0x213   :  { %v2595_v52 = vadd.f32 %v1431_v29, %v1343_v34 }
 0x218   :  { %v1346_v14 = vpop.f32.mrf.mxu2  ;;  %v1439_v33 = vpop.f32.mrf.mxu3 }
 0x219   :  { %v1347_v59 = vadd.f32 %v1346_v14, %v2529_v45 }
 0x21b   :  { %v2598_v9 = vadd.f32 %v1435_v58, %v1347_v59 }
 0x220   :  { %v1350_v57 = vpop.f32.mrf.mxu2  ;;  %v1443_v40 = vpop.f32.mrf.mxu3 }
 0x221   :  { %v1351_v15 = vadd.f32 %v1350_v57, %v2534_v27  ;;  %v1143_v27 = vpop.f32.mrf.mxu0 }
 0x223   :  { %v2601_v38 = vadd.f32 %v1439_v33, %v1351_v15 }
 0x228   :  { %v1354_v49 = vpop.f32.mrf.mxu2  ;;  %v1447_v41 = vpop.f32.mrf.mxu3 }
 0x229   :  { %v1355_v37 = vadd.f32 %v1354_v49, %v2539_v10  ;;  %v1148_v61 = vpop.f32.mrf.mxu0 }
 0x22a   :  { %v1149_v4 = vadd.f32 %v1148_v61, %v2567_v62 }
 0x22b   :  { %v2604_v43 = vadd.f32 %v1443_v40, %v1355_v37 }
 0x22c   :  { %v1266_v40 = vadd.f32 %v1265_v53, %v1149_v4 }
 0x230   :  { %v1358_v12 = vpop.f32.mrf.mxu2  ;;  %v1451_v35 = vpop.f32.mrf.mxu3 }
 0x231   :  { %v1359_v1 = vadd.f32 %v1358_v12, %v2544_v16  ;;  %v1153_v7 = vpop.f32.mrf.mxu0 }
 0x232   :  { %v1154_v28 = vadd.f32 %v1153_v7, %v2572_v32 }
 0x233   :  { %v2607_v23 = vadd.f32 %v1447_v41, %v1359_v1 }
 0x234   :  { %v1272_v33 = vadd.f32 %v1271_v21, %v1154_v28 }
 0x238   :  { %v1362_v45 = vpop.f32.mrf.mxu2  ;;  %v1455_v54 = vpop.f32.mrf.mxu3 }
 0x239   :  { %v1363_v47 = vadd.f32 %v1362_v45, %v2549_v48  ;;  %v1158_v56 = vpop.f32.mrf.mxu0 }
 0x23a   :  { %v1159_v50 = vadd.f32 %v1158_v56, %v2577_v11  ;;  %v1144_v11 = vadd.f32 %v1143_v27, %v2562_v20 }
 0x23b   :  { %v2610_v3 = vadd.f32 %v1451_v35, %v1363_v47 }
 0x23c   :  { %v1260_v12 = vadd.f32 %v1259_v18, %v1144_v11 }
 0x240   :  { %v1366_v22 = vpop.f32.mrf.mxu2  ;;  %v1459_v39 = vpop.f32.mrf.mxu3 }
 0x241   :  { %v1367_v2 = vadd.f32 %v1366_v22, %v2554_v46  ;;  %v1277_v46 = vpop.f32.mrf.mxu1  ;;  %v1163_v8 = vpop.f32.mrf.mxu0 }
 0x242   :  { %v1278_v25 = vadd.f32 %v1277_v46, %v1159_v50 }
 0x243   :  { %v2613_v10 = vadd.f32 %v1455_v54, %v1367_v2 }
 0x248   :  { %v1370_v42 = vpop.f32.mrf.mxu2  ;;  %v1463_v55 = vpop.f32.mrf.mxu3 }
 0x249   :  { %v1371_v16 = vadd.f32 %v1370_v42, %v2559_v26  ;;  %v1164_v26 = vadd.f32 %v1163_v8, %v2582_v24  ;;  %v1283_v31 = vpop.f32.mrf.mxu1  ;;  %v1168_v14 = vpop.f32.mrf.mxu0 }
 0x24a   :  { %v1169_v57 = vadd.f32 %v1168_v14, %v2586_v30 }
 0x24b   :  { %v2616_v0 = vadd.f32 %v1459_v39, %v1371_v16  ;;  %v1284_v5 = vadd.f32 %v1283_v31, %v1164_v26 }
 0x24d   :  { %v1495_v8 = vmax.f32 %v2616_v0, 0.0  ;;  %v1494_v0 = vmax.f32 %v2613_v10, 0.0  ;;  %v1493_v10 = vmax.f32 %v2610_v3, 0.0  ;;  %v1492_v3 = vmax.f32 %v2607_v23, 0.0 }
 0x24e   :  { %v1491_v23 = vmax.f32 %v2604_v43, 0.0  ;;  %v1490_v43 = vmax.f32 %v2601_v38, 0.0  ;;  %v1489_v38 = vmax.f32 %v2598_v9, 0.0  ;;  %v1488_v9 = vmax.f32 %v2595_v52, 0.0 }
 0x24f   :  { %v1537_v14 = vsel %vm735_vm1, %v1494_v0, 0  ;;  %v1487_v52 = vmax.f32 %v2592_v63, 0.0  ;;  %v1486_v63 = vmax.f32 %v2589_v36, 0.0 }
 0x250   :  { %v1374_v17 = vpop.f32.mrf.mxu2  ;;  %v1467_v48 = vpop.f32.mrf.mxu3  ;;  %v1519_v0 = vsel %vm735_vm1, %v1488_v9, 0 }
 0x251   :  { %v1289_v32 = vpop.f32.mrf.mxu1  ;;  %v1375_v22 = vadd.f32 %v1374_v17, %v1260_v12  ;;  %v1531_v12 = vsel %vm735_vm1, %v1492_v3, 0  ;;  %v1513_v36 = vsel %vm735_vm1, %v1486_v63, 0 }
 0x252   :  { %v1290_v37 = vadd.f32 %v1289_v32, %v1169_v57 }
 0x253   :  { %v1464_v16 = vadd.f32 %v1463_v55, %v1375_v22  ;;  %v2727_v22 = vand.u32 4294901760, %v1531_v12 }
 0x255   :  { %v1496_v55 = vmax.f32 %v1464_v16, 0.0 }
 0x258   :  { %v1378_v51 = vpop.f32.mrf.mxu2  ;;  %v1471_v6 = vpop.f32.mrf.mxu3 }
 0x259   :  { %v1379_v41 = vadd.f32 %v1378_v51, %v1266_v40 }
 0x25b   :  { %v1468_v39 = vadd.f32 %v1467_v48, %v1379_v41 }
 0x25d   :  { %v1497_v61 = vmax.f32 %v1468_v39, 0.0 }
 0x25f   :  { %v1546_v51 = vsel %vm735_vm1, %v1497_v61, 0 }
 0x260   :  { %v1382_v44 = vpop.f32.mrf.mxu2  ;;  %v1475_v60 = vpop.f32.mrf.mxu3  ;;  %v2658_v50 = vand.u32 4294901760, %v1546_v51 }
 0x261   :  { %v1383_v24 = vadd.f32 %v1382_v44, %v1272_v33 }
 0x263   :  { %v1472_v1 = vadd.f32 %v1471_v6, %v1383_v24  ;;  %v1534_v24 = vsel %vm735_vm1, %v1493_v10, 0 }
 0x265   :  { %v1498_v20 = vmax.f32 %v1472_v1, 0.0 }
 0x267   :  { %v1549_v17 = vsel %vm735_vm1, %v1498_v20, 0 }
 0x268   :  { %v1386_v13 = vpop.f32.mrf.mxu2  ;;  %v1479_v29 = vpop.f32.mrf.mxu3  ;;  %v2643_v6 = vand.u32 4294901760, %v1549_v17 }
 0x269   :  { %v1387_v58 = vadd.f32 %v1386_v13, %v1278_v25  ;;  %v1543_v13 = vsel %vm735_vm1, %v1496_v55, 0 }
 0x26a   :  { %v2665_v28 = vsub.f32 %v1549_v17, %v2643_v6  ;;  %v2749_v17 = vsub.f32 %v1531_v12, %v2727_v22 }
 0x26b   :  { %v1476_v15 = vadd.f32 %v1475_v60, %v1387_v58  ;;  %v2679_v58 = vsub.f32 %v1546_v51, %v2658_v50  ;;  %v1522_v51 = vsel %vm735_vm1, %v1489_v38, 0 }
 0x26d   :  { %v1499_v62 = vmax.f32 %v1476_v15, 0.0  ;;  %v1627_v40 = vand.u32 4294901760, %v2679_v58  ;;  %v2699_v15 = vand.u32 4294901760, %v1537_v14 }
 0x26f   :  { %v1552_v27 = vsel %vm735_vm1, %v1499_v62, 0  ;;  %v1628_v32 = vsub.f32 %v2679_v58, %v1627_v40 }
 0x270   :  { %v1390_v19 = vpop.f32.mrf.mxu2  ;;  %v1483_v47 = vpop.f32.mrf.mxu3  ;;  %v2629_v53 = vand.u32 4294901760, %v1552_v27 }
 0x271   :  { %v1391_v34 = vadd.f32 %v1390_v19, %v1284_v5  ;;  %v1540_v5 = vsel %vm735_vm1, %v1495_v8, 0  ;;  %v1629_v1 = vand.u32 4294901760, %v1628_v32 }
 0x272   :  { %v2648_v44 = vsub.f32 %v1552_v27, %v2629_v53  ;;  %v2685_v33 = vand.u32 4294901760, %v1540_v5 }
 0x273   :  { %v1480_v59 = vadd.f32 %v1479_v29, %v1391_v34  ;;  %v2671_v29 = vand.u32 4294901760, %v1543_v13  ;;  %v1621_v34 = vand.u32 4294901760, %v2665_v28 }
 0x274   :  { %v1615_v25 = vand.u32 4294901760, %v2648_v44  ;;  %v2707_v41 = vsub.f32 %v1540_v5, %v2685_v33  ;;  %v2769_v5 = vand.u32 4294901760, %v1522_v51 }
 0x275   :  { %v1500_v49 = vmax.f32 %v1480_v59, 0.0  ;;  %v1622_v57 = vsub.f32 %v2665_v28, %v1621_v34  ;;  %v2693_v11 = vsub.f32 %v1543_v13, %v2671_v29 }
 0x276   :  { %v1616_v4 = vsub.f32 %v2648_v44, %v1615_v25 }
 0x277   :  { %v1555_v45 = vsel %vm735_vm1, %v1500_v49, 0  ;;  %v1623_v49 = vand.u32 4294901760, %v1622_v57  ;;  %v2783_v57 = vand.u32 4294901760, %v1519_v0 }
 0x278   :  { %v1394_v35 = vpop.f32.mrf.mxu2  ;;  %v2625_v2 = vand.u32 4294901760, %v1555_v45  ;;  %v1617_v59 = vand.u32 4294901760, %v1616_v4 }
 0x279   :  { %v1395_v54 = vadd.f32 %v1394_v35, %v1290_v37  ;;  %v1633_v37 = vand.u32 4294901760, %v2693_v11  ;;  %v2713_v35 = vand.u32 4294901760, %v1534_v24 }
 0x27a   :  { %v2634_v21 = vsub.f32 %v1555_v45, %v2625_v2  ;;  %v2721_v45 = vsub.f32 %v1537_v14, %v2699_v15 }
 0x27b   :  { %v1484_v30 = vadd.f32 %v1483_v47, %v1395_v54  ;;  %v1634_v62 = vsub.f32 %v2693_v11, %v1633_v37  ;;  %v1639_v54 = vand.u32 4294901760, %v2707_v41  ;;  %v1528_v47 = vsel %vm735_vm1, %v1491_v23, 0 }
 0x27c   :  { %v1609_v46 = vand.u32 4294901760, %v2634_v21  ;;  %v2735_v20 = vsub.f32 %v1534_v24, %v2713_v35  ;;  %v1645_v27 = vand.u32 4294901760, %v2721_v45  ;;  %v2741_v16 = vand.u32 4294901760, %v1528_v47 }
 0x27d   :  { %v1501_v42 = vmax.f32 %v1484_v30, 0.0  ;;  %v1635_v39 = vand.u32 4294901760, %v1634_v62  ;;  %v1640_v30 = vsub.f32 %v2707_v41, %v1639_v54  ;;  %v2804_v62 = vsub.f32 %v1519_v0, %v2783_v57 }
 0x27e   :  { %v1610_v31 = vsub.f32 %v2634_v21, %v1609_v46  ;;  %v1651_v55 = vand.u32 4294901760, %v2735_v20 }
 0x27f   :  { %v1558_v18 = vsel %vm735_vm1, %v1501_v42, 0  ;;  %v1525_v42 = vsel %vm735_vm1, %v1490_v43, 0  ;;  %v1641_v61 = vand.u32 4294901760, %v1640_v30 }
 0x280   :  { %v2631_v7 = vand.u32 4294901760, %v1558_v18  ;;  %v1611_v19 = vand.u32 4294901760, %v1610_v31  ;;  %v1652_v13 = vsub.f32 %v2735_v20, %v1651_v55  ;;  %v1657_v31 = vand.u32 4294901760, %v2749_v17 }
 0x282   :  { %v2638_v48 = vsub.f32 %v1558_v18, %v2631_v7  ;;  %1561 = vmatpush.xpose.msrb.mxu0 %v2631_v7  ;;  %1757 = vmatpush.xpose.msra.mxu3 %v2631_v7  ;;  %v1646_v18 = vsub.f32 %v2721_v45, %v1645_v27  ;;  %v1658_v4 = vsub.f32 %v2749_v17, %v1657_v31 }
 0x284   :  { %1704 = vmatpush.xpose.msra.mxu2 %v2638_v48  ;;  %v1603_v56 = vand.u32 4294901760, %v2638_v48  ;;  %v1647_v8 = vand.u32 4294901760, %v1646_v18  ;;  %v1659_v3 = vand.u32 4294901760, %v1658_v4 }
 0x286   :  { %1563 = vmatpush.xpose.msrb.mxu0 %v2625_v2  ;;  %1759 = vmatpush.xpose.msra.mxu3 %v2625_v2  ;;  %v1604_v60 = vsub.f32 %v2638_v48, %v1603_v56 }
 0x288   :  { %1707 = vmatpush.xpose.msra.mxu2 %v2634_v21  ;;  %v1605_v26 = vand.u32 4294901760, %v1604_v60  ;;  %v2755_v60 = vand.u32 4294901760, %v1525_v42  ;;  %v1502_v21 = vld [vmem:[%s2897_s5] sm:$0xff] }
 0x289   :  { %v1510_v48 = vsel %vm735_vm1, %v1502_v21, 0 }
 0x28a   :  { %1565 = vmatpush.xpose.msrb.mxu0 %v2629_v53  ;;  %1606 = vmatpush.xpose.msrb.mxu1 %v1605_v26  ;;  %v2763_v26 = vsub.f32 %v1528_v47, %v2741_v16  ;;  %v2777_v10 = vsub.f32 %v1525_v42, %v2755_v60  ;;  %v2808_v47 = vand.u32 4294901760, %v1513_v36  ;;  %v1681_v42 = vand.u32 4294901760, %v2804_v62 }
 0x28b   :  { %1761 = vmatpush.xpose.msra.mxu3 %v2629_v53 }
 0x28c   :  { %1710 = vmatpush.xpose.msra.mxu2 %v2648_v44  ;;  %v1663_v14 = vand.u32 4294901760, %v2763_v26  ;;  %v1669_v32 = vand.u32 4294901760, %v2777_v10  ;;  %v1682_v18 = vsub.f32 %v2804_v62, %v1681_v42  ;;  %v2826_v9 = vsub.f32 %v1513_v36, %v2808_v47 }
 0x28e   :  { %1567 = vmatpush.xpose.msrb.mxu0 %v2643_v6  ;;  %1612 = vmatpush.xpose.msrb.mxu1 %v1611_v19  ;;  %v1653_v19 = vand.u32 4294901760, %v1652_v13  ;;  %v1664_v24 = vsub.f32 %v2763_v26, %v1663_v14 }
 0x28f   :  { %1763 = vmatpush.xpose.msra.mxu3 %v2643_v6 }
 0x290   :  { %1713 = vmatpush.xpose.msra.mxu2 %v2665_v28  ;;  %v1665_v12 = vand.u32 4294901760, %v1664_v24 }
 0x292   :  { %1569 = vmatpush.xpose.msrb.mxu0 %v2658_v50  ;;  %1618 = vmatpush.xpose.msrb.mxu1 %v1617_v59  ;;  %v1516_v59 = vsel %vm735_vm1, %v1487_v52, 0  ;;  %v1693_v52 = vand.u32 4294901760, %v2826_v9 }
 0x293   :  { %1765 = vmatpush.xpose.msra.mxu3 %v2658_v50  ;;  %v2796_v23 = vand.u32 4294901760, %v1516_v59 }
 0x294   :  { %1716 = vmatpush.xpose.msra.mxu2 %v2679_v58 }
 0x295   :  { %v2816_v38 = vsub.f32 %v1516_v59, %v2796_v23 }
 0x296   :  { %1571 = vmatpush.xpose.msrb.mxu0 %v2671_v29  ;;  %1624 = vmatpush.xpose.msrb.mxu1 %v1623_v49  ;;  %v2791_v49 = vsub.f32 %v1522_v51, %v2769_v5 }
 0x297   :  { %1767 = vmatpush.xpose.msra.mxu3 %v2671_v29  ;;  %v1687_v51 = vand.u32 4294901760, %v2816_v38 }
 0x298   :  { %1719 = vmatpush.xpose.msra.mxu2 %v2693_v11  ;;  %v1675_v43 = vand.u32 4294901760, %v2791_v49 }
 0x299   :  { %v1688_v13 = vsub.f32 %v2816_v38, %v1687_v51 }
 0x29a   :  { %1573 = vmatpush.xpose.msrb.mxu0 %v2685_v33  ;;  %1630 = vmatpush.xpose.msrb.mxu1 %v1629_v1  ;;  %v1670_v1 = vsub.f32 %v2777_v10, %v1669_v32  ;;  %v1676_v30 = vsub.f32 %v2791_v49, %v1675_v43 }
 0x29b   :  { %1769 = vmatpush.xpose.msra.mxu3 %v2685_v33  ;;  %v1689_v0 = vand.u32 4294901760, %v1688_v13 }
 0x29c   :  { %1722 = vmatpush.xpose.msra.mxu2 %v2707_v41 }
 0x29e   :  { %1575 = vmatpush.xpose.msrb.mxu0 %v2699_v15  ;;  %1636 = vmatpush.xpose.msrb.mxu1 %v1635_v39  ;;  %v1671_v39 = vand.u32 4294901760, %v1670_v1 }
 0x29f   :  { %1771 = vmatpush.xpose.msra.mxu3 %v2699_v15 }
 0x2a0   :  { %1725 = vmatpush.xpose.msra.mxu2 %v2721_v45 }
 0x2a2   :  { %1577 = vmatpush.xpose.msrb.mxu0 %v2713_v35  ;;  %1642 = vmatpush.xpose.msrb.mxu1 %v1641_v61  ;;  %v1677_v61 = vand.u32 4294901760, %v1676_v30 }
 0x2a3   :  { %1773 = vmatpush.xpose.msra.mxu3 %v2713_v35 }
 0x2a4   :  { %1728 = vmatpush.xpose.msra.mxu2 %v2735_v20 }
 0x2a6   :  { %1579 = vmatpush.xpose.msrb.mxu0 %v2727_v22  ;;  %1648 = vmatpush.xpose.msrb.mxu1 %v1647_v8  ;;  %v1683_v8 = vand.u32 4294901760, %v1682_v18 }
 0x2a7   :  { %1775 = vmatpush.xpose.msra.mxu3 %v2727_v22 }
 0x2a8   :  { %1731 = vmatpush.xpose.msra.mxu2 %v2749_v17 }
 0x2aa   :  { %1581 = vmatpush.xpose.msrb.mxu0 %v2741_v16  ;;  %1654 = vmatpush.xpose.msrb.mxu1 %v1653_v19  ;;  %v1694_v19 = vsub.f32 %v2826_v9, %v1693_v52 }
 0x2ab   :  { %1777 = vmatpush.xpose.msra.mxu3 %v2741_v16 }
 0x2ac   :  { %1734 = vmatpush.xpose.msra.mxu2 %v2763_v26  ;;  %v1695_v4 = vand.u32 4294901760, %v1694_v19 }
 0x2ae   :  { %1583 = vmatpush.xpose.msrb.mxu0 %v2755_v60  ;;  %1660 = vmatpush.xpose.msrb.mxu1 %v1659_v3 }
 0x2af   :  { %1779 = vmatpush.xpose.msra.mxu3 %v2755_v60 }
 0x2b0   :  { %1737 = vmatpush.xpose.msra.mxu2 %v2777_v10 }
 0x2b2   :  { %1585 = vmatpush.xpose.msrb.mxu0 %v2769_v5  ;;  %1666 = vmatpush.xpose.msrb.mxu1 %v1665_v12 }
 0x2b3   :  { %1781 = vmatpush.xpose.msra.mxu3 %v2769_v5 }
 0x2b4   :  { %1740 = vmatpush.xpose.msra.mxu2 %v2791_v49 }
 0x2b6   :  { %1587 = vmatpush.xpose.msrb.mxu0 %v2783_v57  ;;  %1672 = vmatpush.xpose.msrb.mxu1 %v1671_v39 }
 0x2b7   :  { %1783 = vmatpush.xpose.msra.mxu3 %v2783_v57 }
 0x2b8   :  { %1743 = vmatpush.xpose.msra.mxu2 %v2804_v62 }
 0x2ba   :  { %1589 = vmatpush.xpose.msrb.mxu0 %v2796_v23  ;;  %1678 = vmatpush.xpose.msrb.mxu1 %v1677_v61 }
 0x2bb   :  { %1785 = vmatpush.xpose.msra.mxu3 %v2796_v23 }
 0x2bc   :  { %1746 = vmatpush.xpose.msra.mxu2 %v2816_v38 }
 0x2be   :  { %1591 = vmatpush.xpose.msrb.mxu0 %v2808_v47  ;;  %1684 = vmatpush.xpose.msrb.mxu1 %v1683_v8 }
 0x2bf   :  { %1787 = vmatpush.xpose.msra.mxu3 %v2808_v47 }
 0x2c0   :  { %1749 = vmatpush.xpose.msra.mxu2 %v2826_v9 }
 0x2c2   :  { %1798 = vmatpush.xpose.msra.mxu0 %v1603_v56  ;;  %1690 = vmatpush.xpose.msrb.mxu1 %v1689_v0 }
 0x2c6   :  { %1802 = vmatpush.xpose.msra.mxu0 %v1609_v46  ;;  %1696 = vmatpush.xpose.msrb.mxu1 %v1695_v4  ;;  %v1503_v46 = vld [vmem:[%s2898_s6] sm:$0xff] }
 0x2ca   :  { %1806 = vmatpush.xpose.msra.mxu0 %v1615_v25  ;;  %1865 = vmatpush.xpose.msra.mxu1 %v2631_v7  ;;  %v1592_v7 = vand.u32 4294901760, %v1510_v48 }
 0x2cc   :  { %v1593_v56 = vsub.f32 %v1510_v48, %v1592_v7  ;;  %1698 = vmatmul.f32.vlgmr.msrb.gmra.mxu1 %v1592_v7 }
 0x2ce   :  { %1810 = vmatpush.xpose.msra.mxu0 %v1621_v34  ;;  %1867 = vmatpush.xpose.msra.mxu1 %v2625_v2  ;;  %v1594_v2 = vand.u32 4294901760, %v1593_v56 }
 0x2cf   :  { %1752 = vmatmul.f32.vlgmr.msra.gmra.mxu2 %v1593_v56 }
 0x2d0   :  { %1791 = vmatmul.f32.vlgmr.msra.gmra.mxu3 %v1594_v2 }
 0x2d2   :  { %1814 = vmatpush.xpose.msra.mxu0 %v1627_v40  ;;  %1869 = vmatpush.xpose.msra.mxu1 %v2629_v53  ;;  %v1595_v53 = vsub.f32 %v1593_v56, %v1594_v2 }
 0x2d4   :  { %v1596_v44 = vand.u32 4294901760, %v1595_v53 }
 0x2d6   :  { %1818 = vmatpush.xpose.msra.mxu0 %v1633_v37  ;;  %1871 = vmatpush.xpose.msra.mxu1 %v2643_v6  ;;  %v1912_v6 = vmov 0  }
 0x2d7   :  { %1597 = vmatmul.f32.vlgmr.msrb.gmra.mxu0 %v1596_v44  ;;  %1909 = vset.pattern.permute.xlu0 %v1912_v6 }
 0x2d8   :  { %1506 = vperm.xlu0 %1909, %v1503_v46  }
 0x2da   :  { %1822 = vmatpush.xpose.msra.mxu0 %v1639_v54  ;;  %1873 = vmatpush.xpose.msra.mxu1 %v2658_v50 }
 0x2de   :  { %1826 = vmatpush.xpose.msra.mxu0 %v1645_v27  ;;  %1875 = vmatpush.xpose.msra.mxu1 %v2671_v29 }
 0x2e2   :  { %1830 = vmatpush.xpose.msra.mxu0 %v1651_v55  ;;  %1877 = vmatpush.xpose.msra.mxu1 %v2685_v33 }
 0x2e6   :  { %1834 = vmatpush.xpose.msra.mxu0 %v1657_v31  ;;  %1879 = vmatpush.xpose.msra.mxu1 %v2699_v15 }
 0x2ea   :  { %1838 = vmatpush.xpose.msra.mxu0 %v1663_v14  ;;  %1881 = vmatpush.xpose.msra.mxu1 %v2713_v35 }
 0x2ee   :  { %1842 = vmatpush.xpose.msra.mxu0 %v1669_v32  ;;  %1883 = vmatpush.xpose.msra.mxu1 %v2727_v22 }
 0x2f2   :  { %1846 = vmatpush.xpose.msra.mxu0 %v1675_v43  ;;  %1885 = vmatpush.xpose.msra.mxu1 %v2741_v16 }
 0x2f6   :  { %1850 = vmatpush.xpose.msra.mxu0 %v1681_v42  ;;  %1887 = vmatpush.xpose.msra.mxu1 %v2755_v60 }
 0x2fa   :  { %1854 = vmatpush.xpose.msra.mxu0 %v1687_v51  ;;  %1889 = vmatpush.xpose.msra.mxu1 %v2769_v5 }
 0x2fe   :  { %1858 = vmatpush.xpose.msra.mxu0 %v1693_v52  ;;  %1891 = vmatpush.xpose.msra.mxu1 %v2783_v57 }
 0x301   :  { %1860 = vmatmul.f32.vlgmr.msra.gmra.mxu0 %v1592_v7 }
 0x302   :  { %1893 = vmatpush.xpose.msra.mxu1 %v2796_v23 }
 0x306   :  { %1895 = vmatpush.xpose.msra.mxu1 %v2808_v47 }
 0x309   :  { %1897 = vmatmul.f32.vlgmr.msra.gmra.mxu1 %v1592_v7 }
 0x349   :  { %v1699_v29 = vpop.f32.mrf.mxu1 }
 0x34a   :  { %v1507_v50 = vpop.permute.xlu0 %1506 }
 0x352   :  { %v1753_v34 = vpop.f32.mrf.mxu2 }
 0x353   :  { %v1792_v11 = vpop.f32.mrf.mxu3 }
 0x354   :  { %v1598_v28 = vpop.f32.mrf.mxu0 }
 0x355   :  { %v1599_v25 = vadd.f32 %v1598_v28, %v1507_v50 }
 0x357   :  { %v1700_v58 = vadd.f32 %v1699_v29, %v1599_v25 }
 0x359   :  { %v1754_v33 = vadd.f32 %v1753_v34, %v1700_v58 }
 0x35b   :  { %v1793_v40 = vadd.f32 %v1792_v11, %v1754_v33 }
 0x37e   :  { %v1861_v15 = vpop.f32.mrf.mxu0 }
 0x37f   :  { %v1862_v41 = vadd.f32 %v1861_v15, %v1793_v40 }
 0x386   :  { %v1898_v37 = vpop.f32.mrf.mxu1 }
 0x387   :  { %v1899_v35 = vadd.f32 %v1898_v37, %v1862_v41 }
 0x389   :  { %1901 = vst [vmem:[%s2899_s7] sm:$0xff] %v1899_v35 }

</bundles_post_ra>
